<compile_context>
chip_gen: v7x
topology: tpu7x:2x2x1
jax: 0.10.0
libtpu: 0.0.40
codegen_flags: <defaults>
</compile_context>

<pallas_src>
import math

import jax
import jax.numpy as jnp
import numpy as np
from jax.experimental import pallas as pl
from jax.experimental.pallas import tpu as pltpu

# --- small config consistent with the module's forward (scaled down) ---
B = 2           # batch_size
S = 16          # maxlen (seq)
D = 32          # d_model
H = 4           # n_heads
DK = 8          # d_k
DV = 8          # d_v
DFF = 4 * D     # d_ff = 4 * d_model
EPS = 1e-5      # LayerNorm eps (PyTorch default)
NEG = -1.0e9    # masked_fill value


def _erf(x):
    """Abramowitz & Stegun 7.1.26 rational approximation, |err| < 1.5e-7."""
    # TODO(synk): switch to lax.erf if/when Mosaic exposes a direct erf lowering.
    a1, a2, a3, a4, a5 = 0.254829592, -0.284496736, 1.421413741, -1.453152027, 1.061405429
    p = 0.3275911
    ax = jnp.abs(x)
    t = 1.0 / (1.0 + p * ax)
    poly = ((((a5 * t + a4) * t + a3) * t + a2) * t + a1) * t
    y = 1.0 - poly * jnp.exp(-ax * ax)
    return jnp.where(x < 0.0, -y, y)


def encoder_layer_kernel(x_ref, mask_ref,
                         w_qkv_ref, b_qkv_ref,
                         w_o_ref, b_o_ref, gamma_ref, beta_ref,
                         w1_ref, b1_ref, w2_ref, b2_ref,
                         out_ref, attn_ref):
    HD = H * DK

    x = x_ref[...]                                   # (B, S, D)
    xf = x.reshape(B * S, D)                         # flattened batch

    # Fused Q/K/V projection: one (B*S, D) @ (D, 3*H*DK) MXU matmul.
    # Weights are pre-transposed host-side; 1/sqrt(d_k) is folded into the
    # Q columns/bias, so no per-head scale multiply is needed below.
    qkv = jnp.dot(xf, w_qkv_ref[...], preferred_element_type=jnp.float32) + b_qkv_ref[...]

    q_p = qkv[:, 0 * HD:1 * HD].reshape(B, S, HD)
    k_p = qkv[:, 1 * HD:2 * HD].reshape(B, S, HD)
    v_p = qkv[:, 2 * HD:3 * HD].reshape(B, S, HD)

    masked = mask_ref[...] > 0.0                     # hoisted out of the head loop

    attn_heads = []
    ctx_heads = []
    for h in range(H):                               # static unrolled head loop
        qh = q_p[:, :, h * DK:(h + 1) * DK]          # (B, S, DK)
        kh = k_p[:, :, h * DK:(h + 1) * DK]          # (B, S, DK)
        vh = v_p[:, :, h * DV:(h + 1) * DV]          # (B, S, DV)

        # batched (over B) scores; contraction on last dims -> no in-kernel k.T
        s = jnp.einsum("bqd,bkd->bqk", qh, kh, preferred_element_type=jnp.float32)
        s = jnp.where(masked, NEG, s)

        # numerically stable softmax over keys
        m = jnp.max(s, axis=-1, keepdims=True)
        e = jnp.exp(s - m)
        a = e * pl.reciprocal(jnp.sum(e, axis=-1, keepdims=True), approx=False)

        attn_heads.append(a.reshape(B, 1, S, S))
        ctx_heads.append(jnp.einsum("bqk,bkd->bqd", a, vh,
                                    preferred_element_type=jnp.float32))

    # single store of all attention heads (instead of H masked sub-stores)
    attn_ref[...] = jnp.concatenate(attn_heads, axis=1)          # (B, H, S, S)

    context = jnp.concatenate(ctx_heads, axis=-1).reshape(B * S, H * DV)

    # output projection (pre-transposed weight) + residual + LayerNorm
    out = jnp.dot(context, w_o_ref[...], preferred_element_type=jnp.float32) + b_o_ref[...]
    xr = out + xf
    mean = jnp.mean(xr, axis=-1, keepdims=True)
    var = jnp.mean((xr - mean) * (xr - mean), axis=-1, keepdims=True)
    xn = (xr - mean) * jax.lax.rsqrt(var + EPS)
    xn = xn * gamma_ref[...] + beta_ref[...]

    # position-wise feed-forward: fc2(gelu(fc1(xn)))  (no residual/LN, per spec)
    h1 = jnp.dot(xn, w1_ref[...], preferred_element_type=jnp.float32) + b1_ref[...]
    g = h1 * 0.5 * (1.0 + _erf(h1 * (1.0 / math.sqrt(2.0))))
    y = jnp.dot(g, w2_ref[...], preferred_element_type=jnp.float32) + b2_ref[...]

    out_ref[...] = y.reshape(B, S, D)


def encoder_layer(x, attn_mask, params):
    (wq, bq, wk, bk, wv, bv, wo, bo, gamma, beta, w1, b1, w2, b2) = params

    scale = 1.0 / math.sqrt(DK)
    # Host-side weight prep (perf feedback): pre-transpose every Linear weight,
    # fuse Q/K/V into a single (D, 3*H*DK) matrix, fold the score scale into Q.
    w_qkv_t = jnp.concatenate([wq.T * scale, wk.T, wv.T], axis=1)    # (D, 3*H*DK)
    b_qkv = jnp.concatenate([bq * scale, bk, bv], axis=1)            # (1, 3*H*DK)
    w_o_t = wo.T                                                     # (H*DV, D)
    w1_t = w1.T                                                      # (D, DFF)
    w2_t = w2.T                                                      # (DFF, D)

    vmem = lambda: pl.BlockSpec(memory_space=pltpu.MemorySpace.VMEM)

    return pl.pallas_call(
        encoder_layer_kernel,
        out_shape=(
            jax.ShapeDtypeStruct((B, S, D), jnp.float32),        # enc_outputs
            jax.ShapeDtypeStruct((B, H, S, S), jnp.float32),     # attn
        ),
        in_specs=[vmem() for _ in range(12)],
        out_specs=(vmem(), vmem()),
    )(x, attn_mask, w_qkv_t, b_qkv, w_o_t, bo, gamma, beta, w1_t, b1, w2_t, b2)


def reference(x, attn_mask, params):
    """Pure-JAX reference mirroring the PyTorch EncoderLayer forward."""
    (wq, bq, wk, bk, wv, bv, wo, bo, gamma, beta, w1, b1, w2, b2) = params

    def proj(inp, w, b, d):
        y = inp @ w.T + b[0]                                   # (B, S, H*d)
        return y.reshape(B, S, H, d).transpose(0, 2, 1, 3)     # (B, H, S, d)

    qs, ks, vs = proj(x, wq, bq, DK), proj(x, wk, bk, DK), proj(x, wv, bv, DV)
    scores = jnp.einsum("bhqd,bhkd->bhqk", qs, ks) / math.sqrt(DK)
    scores = jnp.where(attn_mask[:, None, :, :] > 0.0, NEG, scores)
    attn = jax.nn.softmax(scores, axis=-1)
    ctx = jnp.einsum("bhqk,bhkd->bhqd", attn, vs)
    ctx = ctx.transpose(0, 2, 1, 3).reshape(B, S, H * DV)
    out = ctx @ wo.T + bo[0]
    xr = out + x
    mean = jnp.mean(xr, -1, keepdims=True)
    var = jnp.mean((xr - mean) ** 2, -1, keepdims=True)
    xn = (xr - mean) / jnp.sqrt(var + EPS) * gamma[0] + beta[0]
    h1 = xn @ w1.T + b1[0]
    g = jax.nn.gelu(h1, approximate=False)                     # exact erf GELU
    y = g @ w2.T + b2[0]
    return y, attn


if __name__ == "__main__":
    key = jax.random.PRNGKey(0)
    ks = jax.random.split(key, 13)

    x = jax.random.normal(ks[0], (B, S, D), jnp.float32)
    # mask out the last 3 key positions (1.0 == masked), as in BERT padding masks
    attn_mask = jnp.zeros((B, S, S), jnp.float32).at[:, :, S - 3:].set(1.0)

    init = lambda kk, shape, fan_in: jax.random.uniform(
        kk, shape, jnp.float32, -1.0 / math.sqrt(fan_in), 1.0 / math.sqrt(fan_in))

    params = (
        init(ks[1], (H * DK, D), D),       # w_q
        init(ks[2], (1, H * DK), D),       # b_q
        init(ks[3], (H * DK, D), D),       # w_k
        init(ks[4], (1, H * DK), D),       # b_k
        init(ks[5], (H * DV, D), D),       # w_v
        init(ks[6], (1, H * DV), D),       # b_v
        init(ks[7], (D, H * DV), H * DV),  # w_o (Linear created in MHA.forward)
        init(ks[8], (1, D), H * DV),       # b_o
        jnp.ones((1, D), jnp.float32),     # LayerNorm weight
        jnp.zeros((1, D), jnp.float32),    # LayerNorm bias
        init(ks[9], (DFF, D), D),          # fc1 weight
        init(ks[10], (1, DFF), D),         # fc1 bias
        init(ks[11], (D, DFF), DFF),       # fc2 weight
        init(ks[12], (1, D), DFF),         # fc2 bias
    )

    enc_out, attn = encoder_layer(x, attn_mask, params)
    jax.block_until_ready((enc_out, attn))

    ref_out, ref_attn = reference(x, attn_mask, params)
    assert np.allclose(np.asarray(attn), np.asarray(ref_attn), atol=1e-5, rtol=1e-4)
    assert np.allclose(np.asarray(enc_out), np.asarray(ref_out), atol=1e-4, rtol=1e-4)

    print("KERNEL_OK")
</pallas_src>

<mosaic_0001>
module attributes {stable_mosaic.version = 11 : i64} {
  func.func @encoder_layer_kernel(%arg0: memref<2x16x32xf32, #tpu.memory_space<vmem>>, %arg1: memref<2x16x16xf32, #tpu.memory_space<vmem>>, %arg2: memref<32x96xf32, #tpu.memory_space<vmem>>, %arg3: memref<1x96xf32, #tpu.memory_space<vmem>>, %arg4: memref<32x32xf32, #tpu.memory_space<vmem>>, %arg5: memref<1x32xf32, #tpu.memory_space<vmem>>, %arg6: memref<1x32xf32, #tpu.memory_space<vmem>>, %arg7: memref<1x32xf32, #tpu.memory_space<vmem>>, %arg8: memref<32x128xf32, #tpu.memory_space<vmem>>, %arg9: memref<1x128xf32, #tpu.memory_space<vmem>>, %arg10: memref<128x32xf32, #tpu.memory_space<vmem>>, %arg11: memref<1x32xf32, #tpu.memory_space<vmem>>, %arg12: memref<2x16x32xf32, #tpu.memory_space<vmem>>, %arg13: memref<2x4x16x16xf32, #tpu.memory_space<vmem>>) attributes {dimension_semantics = [], scalar_prefetch = 0 : i64, scratch_operands = 0 : i64, tpu.core_type = #tpu.core_type<tc>} {
    %c0 = arith.constant 0 : index
    %c0_0 = arith.constant 0 : index
    %c0_1 = arith.constant 0 : index
    %0 = vector.load %arg0[%c0, %c0_0, %c0_1] : memref<2x16x32xf32, #tpu.memory_space<vmem>>, vector<2x16x32xf32>
    %1 = vector.shape_cast %0 : vector<2x16x32xf32> to vector<32x32xf32>
    %c0_2 = arith.constant 0 : index
    %c0_3 = arith.constant 0 : index
    %2 = vector.load %arg2[%c0_2, %c0_3] : memref<32x96xf32, #tpu.memory_space<vmem>>, vector<32x96xf32>
    %cst = arith.constant dense<0.000000e+00> : vector<32x96xf32>
    %3 = tpu.matmul %1, %2, %cst {dimension_numbers = #tpu.dot_dimension_numbers<[1], [0], [0], [1], [0, 0, 1, 1], [], []>} : vector<32x32xf32>, vector<32x96xf32>, vector<32x96xf32> -> vector<32x96xf32>
    %c0_4 = arith.constant 0 : index
    %c0_5 = arith.constant 0 : index
    %4 = vector.load %arg3[%c0_4, %c0_5] : memref<1x96xf32, #tpu.memory_space<vmem>>, vector<1x96xf32>
    %5 = vector.broadcast %4 : vector<1x96xf32> to vector<32x96xf32>
    %6 = arith.addf %3, %5 : vector<32x96xf32>
    %7 = vector.extract_strided_slice %6 {offsets = [0, 0], sizes = [32, 32], strides = [1, 1]} : vector<32x96xf32> to vector<32x32xf32>
    %8 = vector.shape_cast %7 : vector<32x32xf32> to vector<2x16x32xf32>
    %9 = vector.extract_strided_slice %6 {offsets = [0, 32], sizes = [32, 32], strides = [1, 1]} : vector<32x96xf32> to vector<32x32xf32>
    %10 = vector.shape_cast %9 : vector<32x32xf32> to vector<2x16x32xf32>
    %11 = vector.extract_strided_slice %6 {offsets = [0, 64], sizes = [32, 32], strides = [1, 1]} : vector<32x96xf32> to vector<32x32xf32>
    %12 = vector.shape_cast %11 : vector<32x32xf32> to vector<2x16x32xf32>
    %c0_6 = arith.constant 0 : index
    %c0_7 = arith.constant 0 : index
    %c0_8 = arith.constant 0 : index
    %13 = vector.load %arg1[%c0_6, %c0_7, %c0_8] : memref<2x16x16xf32, #tpu.memory_space<vmem>>, vector<2x16x16xf32>
    %cst_9 = arith.constant 0.000000e+00 : f32
    %14 = vector.broadcast %cst_9 : f32 to vector<2x16x16xf32>
    %15 = arith.cmpf ogt, %13, %14 : vector<2x16x16xf32>
    %16 = vector.extract_strided_slice %8 {offsets = [0, 0, 0], sizes = [2, 16, 8], strides = [1, 1, 1]} : vector<2x16x32xf32> to vector<2x16x8xf32>
    %17 = vector.extract_strided_slice %10 {offsets = [0, 0, 0], sizes = [2, 16, 8], strides = [1, 1, 1]} : vector<2x16x32xf32> to vector<2x16x8xf32>
    %18 = vector.extract_strided_slice %12 {offsets = [0, 0, 0], sizes = [2, 16, 8], strides = [1, 1, 1]} : vector<2x16x32xf32> to vector<2x16x8xf32>
    "tpu.trace_start"() <{level = 10 : i32, message = "bqd,bkd->bqk"}> : () -> ()
    %cst_10 = arith.constant dense<0.000000e+00> : vector<2x16x16xf32>
    %19 = tpu.matmul %16, %17, %cst_10 {dimension_numbers = #tpu.dot_dimension_numbers<[2], [2], [1], [1], [0, 0, 0, 1, 1, 1], [0], [0]>} : vector<2x16x8xf32>, vector<2x16x8xf32>, vector<2x16x16xf32> -> vector<2x16x16xf32>
    %cst_11 = arith.constant -1.000000e+09 : f32
    "tpu.trace_stop"() : () -> ()
    %20 = vector.broadcast %cst_11 : f32 to vector<2x16x16xf32>
    %21 = arith.select %15, %20, %19 : vector<2x16x16xi1>, vector<2x16x16xf32>
    %cst_12 = arith.constant dense<0xFF800000> : vector<2x16xf32>
    %22 = vector.multi_reduction <maximumf>, %21, %cst_12 [2] : vector<2x16x16xf32> to vector<2x16xf32>
    %23 = vector.shape_cast %22 : vector<2x16xf32> to vector<2x16x1xf32>
    %24 = vector.broadcast %23 : vector<2x16x1xf32> to vector<2x16x16xf32>
    %25 = arith.subf %21, %24 : vector<2x16x16xf32>
    %26 = math.exp %25 : vector<2x16x16xf32>
    %cst_13 = arith.constant dense<0.000000e+00> : vector<2x16xf32>
    %27 = vector.multi_reduction <add>, %26, %cst_13 [2] : vector<2x16x16xf32> to vector<2x16xf32>
    %28 = vector.shape_cast %27 : vector<2x16xf32> to vector<2x16x1xf32>
    %29 = tpu.reciprocal %28 : vector<2x16x1xf32> -> vector<2x16x1xf32>
    %30 = vector.broadcast %29 : vector<2x16x1xf32> to vector<2x16x16xf32>
    %31 = arith.mulf %26, %30 : vector<2x16x16xf32>
    %32 = vector.shape_cast %31 : vector<2x16x16xf32> to vector<2x1x16x16xf32>
    "tpu.trace_start"() <{level = 10 : i32, message = "bqk,bkd->bqd"}> : () -> ()
    %cst_14 = arith.constant dense<0.000000e+00> : vector<2x16x8xf32>
    %33 = tpu.matmul %31, %18, %cst_14 {dimension_numbers = #tpu.dot_dimension_numbers<[2], [1], [1], [2], [0, 0, 0, 1, 1, 2], [0], [0]>} : vector<2x16x16xf32>, vector<2x16x8xf32>, vector<2x16x8xf32> -> vector<2x16x8xf32>
    "tpu.trace_stop"() : () -> ()
    %34 = vector.extract_strided_slice %8 {offsets = [0, 0, 8], sizes = [2, 16, 8], strides = [1, 1, 1]} : vector<2x16x32xf32> to vector<2x16x8xf32>
    %35 = vector.extract_strided_slice %10 {offsets = [0, 0, 8], sizes = [2, 16, 8], strides = [1, 1, 1]} : vector<2x16x32xf32> to vector<2x16x8xf32>
    %36 = vector.extract_strided_slice %12 {offsets = [0, 0, 8], sizes = [2, 16, 8], strides = [1, 1, 1]} : vector<2x16x32xf32> to vector<2x16x8xf32>
    "tpu.trace_start"() <{level = 10 : i32, message = "bqd,bkd->bqk"}> : () -> ()
    %cst_15 = arith.constant dense<0.000000e+00> : vector<2x16x16xf32>
    %37 = tpu.matmul %34, %35, %cst_15 {dimension_numbers = #tpu.dot_dimension_numbers<[2], [2], [1], [1], [0, 0, 0, 1, 1, 1], [0], [0]>} : vector<2x16x8xf32>, vector<2x16x8xf32>, vector<2x16x16xf32> -> vector<2x16x16xf32>
    %cst_16 = arith.constant -1.000000e+09 : f32
    "tpu.trace_stop"() : () -> ()
    %38 = vector.broadcast %cst_16 : f32 to vector<2x16x16xf32>
    %39 = arith.select %15, %38, %37 : vector<2x16x16xi1>, vector<2x16x16xf32>
    %cst_17 = arith.constant dense<0xFF800000> : vector<2x16xf32>
    %40 = vector.multi_reduction <maximumf>, %39, %cst_17 [2] : vector<2x16x16xf32> to vector<2x16xf32>
    %41 = vector.shape_cast %40 : vector<2x16xf32> to vector<2x16x1xf32>
    %42 = vector.broadcast %41 : vector<2x16x1xf32> to vector<2x16x16xf32>
    %43 = arith.subf %39, %42 : vector<2x16x16xf32>
    %44 = math.exp %43 : vector<2x16x16xf32>
    %cst_18 = arith.constant dense<0.000000e+00> : vector<2x16xf32>
    %45 = vector.multi_reduction <add>, %44, %cst_18 [2] : vector<2x16x16xf32> to vector<2x16xf32>
    %46 = vector.shape_cast %45 : vector<2x16xf32> to vector<2x16x1xf32>
    %47 = tpu.reciprocal %46 : vector<2x16x1xf32> -> vector<2x16x1xf32>
    %48 = vector.broadcast %47 : vector<2x16x1xf32> to vector<2x16x16xf32>
    %49 = arith.mulf %44, %48 : vector<2x16x16xf32>
    %50 = vector.shape_cast %49 : vector<2x16x16xf32> to vector<2x1x16x16xf32>
    "tpu.trace_start"() <{level = 10 : i32, message = "bqk,bkd->bqd"}> : () -> ()
    %cst_19 = arith.constant dense<0.000000e+00> : vector<2x16x8xf32>
    %51 = tpu.matmul %49, %36, %cst_19 {dimension_numbers = #tpu.dot_dimension_numbers<[2], [1], [1], [2], [0, 0, 0, 1, 1, 2], [0], [0]>} : vector<2x16x16xf32>, vector<2x16x8xf32>, vector<2x16x8xf32> -> vector<2x16x8xf32>
    "tpu.trace_stop"() : () -> ()
    %52 = vector.extract_strided_slice %8 {offsets = [0, 0, 16], sizes = [2, 16, 8], strides = [1, 1, 1]} : vector<2x16x32xf32> to vector<2x16x8xf32>
    %53 = vector.extract_strided_slice %10 {offsets = [0, 0, 16], sizes = [2, 16, 8], strides = [1, 1, 1]} : vector<2x16x32xf32> to vector<2x16x8xf32>
    %54 = vector.extract_strided_slice %12 {offsets = [0, 0, 16], sizes = [2, 16, 8], strides = [1, 1, 1]} : vector<2x16x32xf32> to vector<2x16x8xf32>
    "tpu.trace_start"() <{level = 10 : i32, message = "bqd,bkd->bqk"}> : () -> ()
    %cst_20 = arith.constant dense<0.000000e+00> : vector<2x16x16xf32>
    %55 = tpu.matmul %52, %53, %cst_20 {dimension_numbers = #tpu.dot_dimension_numbers<[2], [2], [1], [1], [0, 0, 0, 1, 1, 1], [0], [0]>} : vector<2x16x8xf32>, vector<2x16x8xf32>, vector<2x16x16xf32> -> vector<2x16x16xf32>
    %cst_21 = arith.constant -1.000000e+09 : f32
    "tpu.trace_stop"() : () -> ()
    %56 = vector.broadcast %cst_21 : f32 to vector<2x16x16xf32>
    %57 = arith.select %15, %56, %55 : vector<2x16x16xi1>, vector<2x16x16xf32>
    %cst_22 = arith.constant dense<0xFF800000> : vector<2x16xf32>
    %58 = vector.multi_reduction <maximumf>, %57, %cst_22 [2] : vector<2x16x16xf32> to vector<2x16xf32>
    %59 = vector.shape_cast %58 : vector<2x16xf32> to vector<2x16x1xf32>
    %60 = vector.broadcast %59 : vector<2x16x1xf32> to vector<2x16x16xf32>
    %61 = arith.subf %57, %60 : vector<2x16x16xf32>
    %62 = math.exp %61 : vector<2x16x16xf32>
    %cst_23 = arith.constant dense<0.000000e+00> : vector<2x16xf32>
    %63 = vector.multi_reduction <add>, %62, %cst_23 [2] : vector<2x16x16xf32> to vector<2x16xf32>
    %64 = vector.shape_cast %63 : vector<2x16xf32> to vector<2x16x1xf32>
    %65 = tpu.reciprocal %64 : vector<2x16x1xf32> -> vector<2x16x1xf32>
    %66 = vector.broadcast %65 : vector<2x16x1xf32> to vector<2x16x16xf32>
    %67 = arith.mulf %62, %66 : vector<2x16x16xf32>
    %68 = vector.shape_cast %67 : vector<2x16x16xf32> to vector<2x1x16x16xf32>
    "tpu.trace_start"() <{level = 10 : i32, message = "bqk,bkd->bqd"}> : () -> ()
    %cst_24 = arith.constant dense<0.000000e+00> : vector<2x16x8xf32>
    %69 = tpu.matmul %67, %54, %cst_24 {dimension_numbers = #tpu.dot_dimension_numbers<[2], [1], [1], [2], [0, 0, 0, 1, 1, 2], [0], [0]>} : vector<2x16x16xf32>, vector<2x16x8xf32>, vector<2x16x8xf32> -> vector<2x16x8xf32>
    "tpu.trace_stop"() : () -> ()
    %70 = vector.extract_strided_slice %8 {offsets = [0, 0, 24], sizes = [2, 16, 8], strides = [1, 1, 1]} : vector<2x16x32xf32> to vector<2x16x8xf32>
    %71 = vector.extract_strided_slice %10 {offsets = [0, 0, 24], sizes = [2, 16, 8], strides = [1, 1, 1]} : vector<2x16x32xf32> to vector<2x16x8xf32>
    %72 = vector.extract_strided_slice %12 {offsets = [0, 0, 24], sizes = [2, 16, 8], strides = [1, 1, 1]} : vector<2x16x32xf32> to vector<2x16x8xf32>
    "tpu.trace_start"() <{level = 10 : i32, message = "bqd,bkd->bqk"}> : () -> ()
    %cst_25 = arith.constant dense<0.000000e+00> : vector<2x16x16xf32>
    %73 = tpu.matmul %70, %71, %cst_25 {dimension_numbers = #tpu.dot_dimension_numbers<[2], [2], [1], [1], [0, 0, 0, 1, 1, 1], [0], [0]>} : vector<2x16x8xf32>, vector<2x16x8xf32>, vector<2x16x16xf32> -> vector<2x16x16xf32>
    %cst_26 = arith.constant -1.000000e+09 : f32
    "tpu.trace_stop"() : () -> ()
    %74 = vector.broadcast %cst_26 : f32 to vector<2x16x16xf32>
    %75 = arith.select %15, %74, %73 : vector<2x16x16xi1>, vector<2x16x16xf32>
    %cst_27 = arith.constant dense<0xFF800000> : vector<2x16xf32>
    %76 = vector.multi_reduction <maximumf>, %75, %cst_27 [2] : vector<2x16x16xf32> to vector<2x16xf32>
    %77 = vector.shape_cast %76 : vector<2x16xf32> to vector<2x16x1xf32>
    %78 = vector.broadcast %77 : vector<2x16x1xf32> to vector<2x16x16xf32>
    %79 = arith.subf %75, %78 : vector<2x16x16xf32>
    %80 = math.exp %79 : vector<2x16x16xf32>
    %cst_28 = arith.constant dense<0.000000e+00> : vector<2x16xf32>
    %81 = vector.multi_reduction <add>, %80, %cst_28 [2] : vector<2x16x16xf32> to vector<2x16xf32>
    %82 = vector.shape_cast %81 : vector<2x16xf32> to vector<2x16x1xf32>
    %83 = tpu.reciprocal %82 : vector<2x16x1xf32> -> vector<2x16x1xf32>
    %84 = vector.broadcast %83 : vector<2x16x1xf32> to vector<2x16x16xf32>
    %85 = arith.mulf %80, %84 : vector<2x16x16xf32>
    %86 = vector.shape_cast %85 : vector<2x16x16xf32> to vector<2x1x16x16xf32>
    "tpu.trace_start"() <{level = 10 : i32, message = "bqk,bkd->bqd"}> : () -> ()
    %cst_29 = arith.constant dense<0.000000e+00> : vector<2x16x8xf32>
    %87 = tpu.matmul %85, %72, %cst_29 {dimension_numbers = #tpu.dot_dimension_numbers<[2], [1], [1], [2], [0, 0, 0, 1, 1, 2], [0], [0]>} : vector<2x16x16xf32>, vector<2x16x8xf32>, vector<2x16x8xf32> -> vector<2x16x8xf32>
    "tpu.trace_stop"() : () -> ()
    %88 = tpu.concatenate %32, %50, %68, %86 in 1 : vector<2x1x16x16xf32>, vector<2x1x16x16xf32>, vector<2x1x16x16xf32>, vector<2x1x16x16xf32> -> vector<2x4x16x16xf32>
    %c0_30 = arith.constant 0 : index
    %c0_31 = arith.constant 0 : index
    %c0_32 = arith.constant 0 : index
    %c0_33 = arith.constant 0 : index
    %89 = vector.load %arg13[%c0_30, %c0_31, %c0_32, %c0_33] : memref<2x4x16x16xf32, #tpu.memory_space<vmem>>, vector<2x4x16x16xf32>
    tpu.vector_store %arg13[%c0_30, %c0_31, %c0_32, %c0_33], %88 {strides = array<i32>} : memref<2x4x16x16xf32, #tpu.memory_space<vmem>>, vector<2x4x16x16xf32>,
    %90 = tpu.concatenate %33, %51, %69, %87 in 2 : vector<2x16x8xf32>, vector<2x16x8xf32>, vector<2x16x8xf32>, vector<2x16x8xf32> -> vector<2x16x32xf32>
    %91 = vector.shape_cast %90 : vector<2x16x32xf32> to vector<32x32xf32>
    %c0_34 = arith.constant 0 : index
    %c0_35 = arith.constant 0 : index
    %92 = vector.load %arg4[%c0_34, %c0_35] : memref<32x32xf32, #tpu.memory_space<vmem>>, vector<32x32xf32>
    %cst_36 = arith.constant dense<0.000000e+00> : vector<32x32xf32>
    %93 = tpu.matmul %91, %92, %cst_36 {dimension_numbers = #tpu.dot_dimension_numbers<[1], [0], [0], [1], [0, 0, 1, 1], [], []>} : vector<32x32xf32>, vector<32x32xf32>, vector<32x32xf32> -> vector<32x32xf32>
    %c0_37 = arith.constant 0 : index
    %c0_38 = arith.constant 0 : index
    %94 = vector.load %arg5[%c0_37, %c0_38] : memref<1x32xf32, #tpu.memory_space<vmem>>, vector<1x32xf32>
    %95 = vector.broadcast %94 : vector<1x32xf32> to vector<32x32xf32>
    %96 = arith.addf %93, %95 : vector<32x32xf32>
    %97 = arith.addf %96, %1 : vector<32x32xf32>
    %cst_39 = arith.constant dense<0.000000e+00> : vector<32xf32>
    %98 = vector.multi_reduction <add>, %97, %cst_39 [1] : vector<32x32xf32> to vector<32xf32>
    %99 = vector.shape_cast %98 : vector<32xf32> to vector<32x1xf32>
    %cst_40 = arith.constant 3.200000e+01 : f32
    %100 = vector.broadcast %cst_40 : f32 to vector<32x1xf32>
    %101 = arith.divf %99, %100 : vector<32x1xf32>
    %102 = vector.broadcast %101 : vector<32x1xf32> to vector<32x32xf32>
    %103 = arith.subf %97, %102 : vector<32x32xf32>
    %104 = vector.broadcast %101 : vector<32x1xf32> to vector<32x32xf32>
    %105 = arith.subf %97, %104 : vector<32x32xf32>
    %106 = arith.mulf %103, %105 : vector<32x32xf32>
    %cst_41 = arith.constant dense<0.000000e+00> : vector<32xf32>
    %107 = vector.multi_reduction <add>, %106, %cst_41 [1] : vector<32x32xf32> to vector<32xf32>
    %108 = vector.shape_cast %107 : vector<32xf32> to vector<32x1xf32>
    %cst_42 = arith.constant 3.200000e+01 : f32
    %109 = vector.broadcast %cst_42 : f32 to vector<32x1xf32>
    %110 = arith.divf %108, %109 : vector<32x1xf32>
    %111 = vector.broadcast %101 : vector<32x1xf32> to vector<32x32xf32>
    %112 = arith.subf %97, %111 : vector<32x32xf32>
    %cst_43 = arith.constant 9.99999974E-6 : f32
    %113 = vector.broadcast %cst_43 : f32 to vector<32x1xf32>
    %114 = arith.addf %110, %113 : vector<32x1xf32>
    %115 = math.rsqrt %114 : vector<32x1xf32>
    %116 = vector.broadcast %115 : vector<32x1xf32> to vector<32x32xf32>
    %117 = arith.mulf %112, %116 : vector<32x32xf32>
    %c0_44 = arith.constant 0 : index
    %c0_45 = arith.constant 0 : index
    %118 = vector.load %arg6[%c0_44, %c0_45] : memref<1x32xf32, #tpu.memory_space<vmem>>, vector<1x32xf32>
    %119 = vector.broadcast %118 : vector<1x32xf32> to vector<32x32xf32>
    %120 = arith.mulf %117, %119 : vector<32x32xf32>
    %c0_46 = arith.constant 0 : index
    %c0_47 = arith.constant 0 : index
    %121 = vector.load %arg7[%c0_46, %c0_47] : memref<1x32xf32, #tpu.memory_space<vmem>>, vector<1x32xf32>
    %122 = vector.broadcast %121 : vector<1x32xf32> to vector<32x32xf32>
    %123 = arith.addf %120, %122 : vector<32x32xf32>
    %c0_48 = arith.constant 0 : index
    %c0_49 = arith.constant 0 : index
    %124 = vector.load %arg8[%c0_48, %c0_49] : memref<32x128xf32, #tpu.memory_space<vmem>>, vector<32x128xf32>
    %cst_50 = arith.constant dense<0.000000e+00> : vector<32x128xf32>
    %125 = tpu.matmul %123, %124, %cst_50 {dimension_numbers = #tpu.dot_dimension_numbers<[1], [0], [0], [1], [0, 0, 1, 1], [], []>} : vector<32x32xf32>, vector<32x128xf32>, vector<32x128xf32> -> vector<32x128xf32>
    %c0_51 = arith.constant 0 : index
    %c0_52 = arith.constant 0 : index
    %126 = vector.load %arg9[%c0_51, %c0_52] : memref<1x128xf32, #tpu.memory_space<vmem>>, vector<1x128xf32>
    %127 = vector.broadcast %126 : vector<1x128xf32> to vector<32x128xf32>
    %128 = arith.addf %125, %127 : vector<32x128xf32>
    %cst_53 = arith.constant 5.000000e-01 : f32
    %129 = vector.broadcast %cst_53 : f32 to vector<32x128xf32>
    %130 = arith.mulf %128, %129 : vector<32x128xf32>
    %cst_54 = arith.constant 0.707106769 : f32
    %131 = vector.broadcast %cst_54 : f32 to vector<32x128xf32>
    %132 = arith.mulf %128, %131 : vector<32x128xf32>
    %133 = math.absf %132 : vector<32x128xf32>
    %cst_55 = arith.constant 0.327591091 : f32
    %134 = vector.broadcast %cst_55 : f32 to vector<32x128xf32>
    %135 = arith.mulf %134, %133 : vector<32x128xf32>
    %cst_56 = arith.constant 1.000000e+00 : f32
    %136 = vector.broadcast %cst_56 : f32 to vector<32x128xf32>
    %137 = arith.addf %136, %135 : vector<32x128xf32>
    %cst_57 = arith.constant 1.000000e+00 : f32
    %138 = vector.broadcast %cst_57 : f32 to vector<32x128xf32>
    %139 = arith.divf %138, %137 : vector<32x128xf32>
    %cst_58 = arith.constant 1.06140542 : f32
    %140 = vector.broadcast %cst_58 : f32 to vector<32x128xf32>
    %141 = arith.mulf %140, %139 : vector<32x128xf32>
    %cst_59 = arith.constant -1.45315206 : f32
    %142 = vector.broadcast %cst_59 : f32 to vector<32x128xf32>
    %143 = arith.addf %141, %142 : vector<32x128xf32>
    %144 = arith.mulf %143, %139 : vector<32x128xf32>
    %cst_60 = arith.constant 1.42141378 : f32
    %145 = vector.broadcast %cst_60 : f32 to vector<32x128xf32>
    %146 = arith.addf %144, %145 : vector<32x128xf32>
    %147 = arith.mulf %146, %139 : vector<32x128xf32>
    %cst_61 = arith.constant -0.284496725 : f32
    %148 = vector.broadcast %cst_61 : f32 to vector<32x128xf32>
    %149 = arith.addf %147, %148 : vector<32x128xf32>
    %150 = arith.mulf %149, %139 : vector<32x128xf32>
    %cst_62 = arith.constant 0.254829586 : f32
    %151 = vector.broadcast %cst_62 : f32 to vector<32x128xf32>
    %152 = arith.addf %150, %151 : vector<32x128xf32>
    %153 = arith.mulf %152, %139 : vector<32x128xf32>
    %cst_63 = arith.constant 0.000000e+00 : f32
    %154 = vector.broadcast %cst_63 : f32 to vector<32x128xf32>
    %155 = arith.subf %154, %133 : vector<32x128xf32>
    %156 = arith.mulf %155, %133 : vector<32x128xf32>
    %157 = math.exp %156 : vector<32x128xf32>
    %158 = arith.mulf %153, %157 : vector<32x128xf32>
    %cst_64 = arith.constant 1.000000e+00 : f32
    %159 = vector.broadcast %cst_64 : f32 to vector<32x128xf32>
    %160 = arith.subf %159, %158 : vector<32x128xf32>
    %cst_65 = arith.constant 0.000000e+00 : f32
    %161 = vector.broadcast %cst_65 : f32 to vector<32x128xf32>
    %162 = arith.cmpf olt, %132, %161 : vector<32x128xf32>
    %cst_66 = arith.constant 0.000000e+00 : f32
    %163 = vector.broadcast %cst_66 : f32 to vector<32x128xf32>
    %164 = arith.subf %163, %160 : vector<32x128xf32>
    %165 = arith.select %162, %164, %160 : vector<32x128xi1>, vector<32x128xf32>
    %cst_67 = arith.constant 1.000000e+00 : f32
    %166 = vector.broadcast %cst_67 : f32 to vector<32x128xf32>
    %167 = arith.addf %166, %165 : vector<32x128xf32>
    %168 = arith.mulf %130, %167 : vector<32x128xf32>
    %c0_68 = arith.constant 0 : index
    %c0_69 = arith.constant 0 : index
    %169 = vector.load %arg10[%c0_68, %c0_69] : memref<128x32xf32, #tpu.memory_space<vmem>>, vector<128x32xf32>
    %cst_70 = arith.constant dense<0.000000e+00> : vector<32x32xf32>
    %170 = tpu.matmul %168, %169, %cst_70 {dimension_numbers = #tpu.dot_dimension_numbers<[1], [0], [0], [1], [0, 0, 1, 1], [], []>} : vector<32x128xf32>, vector<128x32xf32>, vector<32x32xf32> -> vector<32x32xf32>
    %c0_71 = arith.constant 0 : index
    %c0_72 = arith.constant 0 : index
    %171 = vector.load %arg11[%c0_71, %c0_72] : memref<1x32xf32, #tpu.memory_space<vmem>>, vector<1x32xf32>
    %172 = vector.broadcast %171 : vector<1x32xf32> to vector<32x32xf32>
    %173 = arith.addf %170, %172 : vector<32x32xf32>
    %174 = vector.shape_cast %173 : vector<32x32xf32> to vector<2x16x32xf32>
    %c0_73 = arith.constant 0 : index
    %c0_74 = arith.constant 0 : index
    %c0_75 = arith.constant 0 : index
    %175 = vector.load %arg12[%c0_73, %c0_74, %c0_75] : memref<2x16x32xf32, #tpu.memory_space<vmem>>, vector<2x16x32xf32>
    tpu.vector_store %arg12[%c0_73, %c0_74, %c0_75], %174 {strides = array<i32>} : memref<2x16x32xf32, #tpu.memory_space<vmem>>, vector<2x16x32xf32>,
    return
  }
}

</mosaic_0001>

<bundles_post_ra>
// kernel: tpu_custom_call.1
= control target key start
LH: loop header
LB: loop body
LE: loop exit
PB: predicated region body
PF: predicated region fallthrough
CT: control target
= control target key end

     0   :  { %19 = vsyncpa [#allocation3], 0  ;;  %vm60_vm0 = vcmask 261120   ;;  %s3722_s0 = inlined_call_operand.vmem [shape: f32[2,16,32], index: 0, kind: input, shape index: {}]   ;;  %s3723_s1 = inlined_call_operand.vmem [shape: f32[2,16,16], index: 1, kind: input, shape index: {}]   ;;  %s3724_s2 = inlined_call_operand.vmem [shape: f32[32,96], index: 2, kind: input, shape index: {}]   ;;  %s3725_s3 = inlined_call_operand.vmem [shape: f32[1,96], index: 3, kind: input, shape index: {}]   ;;  %s3726_s4 = inlined_call_operand.vmem [shape: f32[32,32], index: 4, kind: input, shape index: {}]   ;;  %s3727_s5 = inlined_call_operand.vmem [shape: f32[1,32], index: 5, kind: input, shape index: {}]   ;;  %s3728_s6 = inlined_call_operand.vmem [shape: f32[1,32], index: 6, kind: input, shape index: {}]   ;;  %s3729_s7 = inlined_call_operand.vmem [shape: f32[1,32], index: 7, kind: input, shape index: {}]   ;;  %s3730_s8 = inlined_call_operand.vmem [shape: f32[32,128], index: 8, kind: input, shape index: {}]   ;;  %s3731_s9 = inlined_call_operand.vmem [shape: f32[1,128], index: 9, kind: input, shape index: {}]   ;;  %s3732_s10 = inlined_call_operand.vmem [shape: f32[128,32], index: 10, kind: input, shape index: {}]   ;;  %s3733_s11 = inlined_call_operand.vmem [shape: f32[1,32], index: 11, kind: input, shape index: {}]   ;;  %s3734_s12 = inlined_call_operand.hbm [shape: f32[2,16,32], index: 12, kind: output, shape index: {0}]   ;;  %s3735_s13 = inlined_call_operand.hbm [shape: f32[2,4,16,16], index: 13, kind: output, shape index: {1}]  }
   0x1   :  { %v49_v0 = vld [vmem:[%s3724_s2] sm:$0xff]  ;;  %v50_v1 = vld [vmem:[%s3724_s2 + $0x8] sm:$0xff]  ;;  %v51_v2 = vld [vmem:[%s3724_s2 + $0x10] sm:$0xff] }
   0x2   :  { %v2770_v3 = vpack.c.bf16 %v50_v1, %v49_v0  ;;  %v52_v4 = vld [vmem:[%s3724_s2 + $0x18] sm:$0xff]  ;;  %v45_v5 = vld [vmem:[%s3722_s0] sm:$0xff] }
   0x3   :  { %v2774_v6 = vpack.c.bf16 %v52_v4, %v51_v2  ;;  %2586 = vmatprep.mubr.msk.f32.mxu1 %vm60_vm0, %v45_v5 }
   0x4   :  { %20 = vsyncpa [#allocation5], 0  ;;  %2771 = vmatprep.subr.bf16.mxu1 %v2770_v3  ;;  %v46_v7 = vld [vmem:[%s3722_s0 + $0x8] sm:$0xff]  ;;  %v47_v8 = vld [vmem:[%s3722_s0 + $0x10] sm:$0xff]  ;;  %vm172_vm1 = vcmask 64512   ;;  %s3143_s25 = smov 96  }
   0x5   :  { %2773 = vmatpush3.bf16.msra.mxu1 %v2770_v3  ;;  %v48_v9 = vld [vmem:[%s3722_s0 + $0x18] sm:$0xff]  ;;  %v2404_v10 = vld [vmem:[%s3725_s3] ss:$0 sm:$0xff]  ;;  %vm3283_vm2 = vmpackc.low %vm172_vm1, %vm172_vm1  ;;  %vm349_vm4 = vcmask 130048   ;;  %s3145_s16 = smov 88   ;;  %s3146_s17 = smov 120  }
   0x6   :  { %2775 = vmatprep.subr.bf16.mxu1 %v2774_v6  ;;  %v3304_v30 = vld [vmem:[%s3723_s1] sm:$0xff]  ;;  %v3309_v31 = vld [vmem:[%s3723_s1 + $0x8] sm:$0xff]  ;;  %v3319_v36 = vld [vmem:[%s3723_s1 + $0x18] sm:$0xff]  ;;  %s3147_s18 = smov 56   ;;  %s3148_s19 = smov 80   ;;  %vm1852_vm8 = vcmask 195584  }
   0x7   :  { %vm162_vm3 = vcmp.gt.f32.partialorder %v3304_v30, 0.0  ;;  %vm163_vm5 = vcmp.gt.f32.partialorder %v3309_v31, 0.0  ;;  %v3326_v38 = vld [vmem:[%s3723_s1 + $0x10] sm:$0xff]  ;;  %vm165_vm6 = vcmp.gt.f32.partialorder %v3319_v36, 0.0  ;;  %s3144_s1 = smov 64   ;;  %s3149_s20 = smov 112  }
   0x8   :  { %vm164_vm7 = vcmp.gt.f32.partialorder %v3326_v38, 0.0  ;;  %s3150_s21 = smov 48   ;;  %s3151_s2 = smov 72  }
   0x9   :  { %2777 = vmatpush3.bf16.msra.mxu1 %v2774_v6  ;;  %s3152_s22 = smov 104   ;;  %s3153_s23 = smov 40  }
   0xa   :  { %s3154_s24 = smov 8  }
   0xc   :  { %2587 = vmatmul.mubr.msk.f32.vlgmr.msra.gmra.mrb[0].mxu1 %vm60_vm0, %v46_v7 }
   0xd   :  { %2589 = vmatprep.mubr.msk.f32.mxu1 %vm60_vm0, %v47_v8 }
  0x10   :  { %2590 = vmatmul.mubr.msk.f32.gmra.mrb[2].mxu1 %vm60_vm0, %v48_v9 }
  0xdf   :  { %v2588_v11 = vpop.f32.mrb[0].mxu1 }
  0xe0   :  { %v3261_v12 = vadd.f32 %v2588_v11, %v2404_v10  ;;  %v139_v13 = vpop.f32.mrb[1].mxu1 }
  0xe1   :  { %v3263_v14 = vadd.f32 %v2404_v10, %v139_v13 }
  0xe3   :  { %2596 = vmatprep.mubr.msk.f32.mxu1 %vm172_vm1, %v3263_v14  ;;  %v3269_v15 = vpack.i.bf16 %v3261_v12, %v3263_v14  ;;  %v2591_v16 = vpop.f32.mrb[2].mxu1 }
  0xe4   :  { %v3271_v17 = vadd.f32 %v2591_v16, %v2404_v10  ;;  %v149_v18 = vpop.f32.mrb[3].mxu1 }
  0xe5   :  { %2924 = vrot.lane.b32.xlu0 %v3269_v15, %s3143_s25  ;;  %v3274_v19 = vadd.f32 %v2404_v10, %v149_v18 }
  0xe7   :  { %v3278_v20 = vpack.i.bf16 %v3271_v17, %v3274_v19 }
  0xe9   :  { %2929 = vrot.lane.b32.xlu0 %v3278_v20, %s3143_s25  ;;  %s3155_s25 = smov 16  }
 0x157   :  { %v2925_v21 = vpop.permute.xlu0 %2924 }
 0x158   :  { %v2927_v22 = vunpack.i.h.bf16 %v2925_v21  ;;  %v2926_v23 = vunpack.i.l.bf16 %v2925_v21 }
 0x15a   :  { %v2778_v25 = vpack.c.bf16 %v2927_v22, %v2926_v23 }
 0x15b   :  { %v2930_v26 = vpop.permute.xlu0 %2929 }
 0x15c   :  { %2780 = vmatprep.subr.msk.bf16.mxu1 %vm3283_vm2, %v2778_v25  ;;  %v2932_v27 = vunpack.i.h.bf16 %v2930_v26  ;;  %v2931_v28 = vunpack.i.l.bf16 %v2930_v26 }
 0x15d   :  { %2783 = vmatpush3.bf16.xpose.msk.msra.mxu1 %vm3283_vm2, %v2778_v25 }
 0x15e   :  { %v2784_v29 = vpack.c.bf16 %v2932_v27, %v2931_v28 }
 0x160   :  { %2786 = vmatprep.subr.msk.bf16.mxu1 %vm3283_vm2, %v2784_v29 }
 0x164   :  { %2597 = vmatmul.mubr.msk.f32.vlgmr.msra.gmra.mrb[4].mxu1 %vm172_vm1, %v3261_v12 }
 0x165   :  { %2789 = vmatpush3.bf16.xpose.msk.msra.mxu1 %vm3283_vm2, %v2784_v29  ;;  %2603 = vmatprep.mubr.msk.f32.mxu1 %vm172_vm1, %v3274_v19 }
 0x16c   :  { %2604 = vmatmul.mubr.msk.f32.vlgmr.msra.gmra.mrb[6].mxu1 %vm172_vm1, %v3271_v17 }
 0x237   :  { %v2598_v32 = vpop.f32.mrb[4].mxu1 }
 0x238   :  { %v247_v33 = vpop.f32.mrb[5].mxu1  ;;  %v346_v37 = vsel %vm163_vm5, -1e+09, %v2598_v32 }
 0x239   :  { %v345_v34 = vsel %vm162_vm3, -1e+09, %v247_v33  ;;  %v353_v39 = vsel %vm349_vm4, %v346_v37, -inf }
 0x23a   :  { %v350_v35 = vsel %vm349_vm4, %v345_v34, -inf }
 0x23b   :  { %351 = vmax.xlane.f32.xlu1 %v350_v35 }
 0x23f   :  { %354 = vmax.xlane.f32.xlu1 %v353_v39  ;;  %v2605_v40 = vpop.f32.mrb[6].mxu1 }
 0x240   :  { %v348_v41 = vsel %vm165_vm6, -1e+09, %v2605_v40  ;;  %v336_v42 = vpop.f32.mrb[7].mxu1 }
 0x241   :  { %v347_v43 = vsel %vm164_vm7, -1e+09, %v336_v42  ;;  %v359_v44 = vsel %vm349_vm4, %v348_v41, -inf }
 0x242   :  { %v356_v45 = vsel %vm349_vm4, %v347_v43, -inf }
 0x243   :  { %360 = vmax.xlane.f32.xlu1 %v359_v44  ;;  %357 = vmax.xlane.f32.xlu0 %v356_v45 }
 0x254   :  { %2934 = vrot.lane.b32.xlu1 %v3269_v15, %s3144_s1 }
 0x258   :  { %2944 = vrot.lane.b32.xlu1 %v3269_v15, %s3145_s16 }
 0x259   :  { %2939 = vrot.lane.b32.xlu0 %v3278_v20, %s3144_s1  ;;  %s3156_s1 = smov 24  }
 0x25c   :  { %2949 = vrot.lane.b32.xlu1 %v3278_v20, %s3145_s16 }
 0x25d   :  { %659 = vrot.lane.b32.xlu0 %v3274_v19, %s3146_s17 }
 0x260   :  { %568 = vrot.lane.b32.xlu1 %v3263_v14, %s3146_s17 }
 0x264   :  { %570 = vrot.lane.b32.xlu1 %v3261_v12, %s3146_s17 }
 0x2c8   :  { %v352_v46 = vpop.xlane.xlu1 %351 }
 0x2c9   :  { %v362_v47 = vsub.f32 %v345_v34, %v352_v46 }
 0x2cb   :  { %v366_v50 = vmul.f32 1.442695, %v362_v47 }
 0x2cc   :  { %v355_v48 = vpop.xlane.xlu1 %354 }
 0x2cd   :  { %v363_v49 = vsub.f32 %v346_v37, %v355_v48 }
 0x2cf   :  { %v368_v51 = vmul.f32 1.442695, %v363_v49 }
 0x2d0   :  { %v361_v52 = vpop.xlane.xlu1 %360  ;;  %v358_v53 = vpop.xlane.xlu0 %357 }
 0x2d1   :  { %3003 = vpow2.f32 %v368_v51  ;;  %v365_v54 = vsub.f32 %v348_v41, %v361_v52  ;;  %v364_v56 = vsub.f32 %v347_v43, %v358_v53 }
 0x2d2   :  { %3005 = vpow2.f32 %v366_v50 }
 0x2d3   :  { %v372_v55 = vmul.f32 1.442695, %v365_v54  ;;  %v370_v63 = vmul.f32 1.442695, %v364_v56 }
 0x2d4   :  { %v2935_v57 = vpop.permute.xlu1 %2934  ;;  %v2940_v58 = vpop.permute.xlu0 %2939 }
 0x2d5   :  { %v2937_v59 = vunpack.i.h.bf16 %v2935_v57  ;;  %v2936_v60 = vunpack.i.l.bf16 %v2935_v57  ;;  %v2942_v61 = vunpack.i.h.bf16 %v2940_v58  ;;  %v2941_v62 = vunpack.i.l.bf16 %v2940_v58 }
 0x2d6   :  { %3007 = vpow2.f32 %v372_v55 }
 0x2d7   :  { %v2790_v0 = vpack.c.bf16 %v2937_v59, %v2936_v60  ;;  %v2794_v2 = vpack.c.bf16 %v2942_v61, %v2941_v62  ;;  %3009 = vpow2.f32 %v370_v63 }
 0x2d8   :  { %v2945_v1 = vpop.permute.xlu1 %2944  ;;  %v660_v43 = vpop.permute.xlu0 %659 }
 0x2d9   :  { %v2947_v3 = vunpack.i.h.bf16 %v2945_v1  ;;  %v2946_v4 = vunpack.i.l.bf16 %v2945_v1  ;;  %2791 = vmatprep.subr.bf16.mxu1 %v2790_v0 }
 0x2da   :  { %2793 = vmatpush3.bf16.msra.mxu1 %v2790_v0 }
 0x2db   :  { %v3004_v5 = vpop.eup %3003  ;;  %2795 = vmatprep.subr.bf16.mxu1 %v2794_v2  ;;  %v2798_v6 = vpack.c.bf16 %v2947_v3, %v2946_v4 }
 0x2dc   :  { %v2950_v7 = vpop.permute.xlu1 %2949  ;;  %v377_v8 = vsel %vm349_vm4, %v3004_v5, 0.0  ;;  %v3006_v9 = vpop.eup %3005 }
 0x2dd   :  { %378 = vadd.xlane.f32.xlu1 %v377_v8  ;;  %2800 = vmatprep.subr.msk.bf16.mxu0 %vm3283_vm2, %v2798_v6  ;;  %v374_v11 = vsel %vm349_vm4, %v3006_v9, 0.0  ;;  %v2952_v33 = vunpack.i.h.bf16 %v2950_v7  ;;  %v2951_v34 = vunpack.i.l.bf16 %v2950_v7 }
 0x2de   :  { %2803 = vmatpush3.bf16.xpose.msk.msra.mxu0 %vm3283_vm2, %v2798_v6 }
 0x2df   :  { %v2804_v39 = vpack.c.bf16 %v2952_v33, %v2951_v34 }
 0x2e0   :  { %v569_v10 = vpop.permute.xlu1 %568  ;;  %v3008_v13 = vpop.eup %3007 }
 0x2e1   :  { %375 = vadd.xlane.f32.xlu1 %v374_v11  ;;  %2624 = vmatprep.mubr.msk.f32.mxu0 %vm172_vm1, %v569_v10  ;;  %v383_v18 = vsel %vm349_vm4, %v3008_v13, 0.0  ;;  %v3010_v21 = vpop.eup %3009 }
 0x2e2   :  { %v380_v22 = vsel %vm349_vm4, %v3010_v21, 0.0 }
 0x2e4   :  { %v571_v16 = vpop.permute.xlu1 %570 }
 0x2e5   :  { %384 = vadd.xlane.f32.xlu1 %v383_v18  ;;  %2625 = vmatmul.mubr.msk.f32.vlgmr.msra.gmra.mrb[0].mxu0 %vm172_vm1, %v571_v16 }
 0x2e9   :  { %381 = vadd.xlane.f32.xlu1 %v380_v22 }
 0x2fa   :  { %661 = vrot.lane.b32.xlu1 %v3271_v17, %s3146_s17 }
 0x36a   :  { %v379_v23 = vpop.xlane.xlu1 %378 }
 0x36b   :  { %3011 = vrcp.f32 %v379_v23 }
 0x36e   :  { %v376_v25 = vpop.xlane.xlu1 %375 }
 0x36f   :  { %3013 = vrcp.f32 %v376_v25 }
 0x372   :  { %v385_v26 = vpop.xlane.xlu1 %384 }
 0x373   :  { %3015 = vrcp.f32 %v385_v26 }
 0x375   :  { %v3012_v27 = vpop.eup %3011 }
 0x376   :  { %v391_v28 = vmul.f32 %v3012_v27, %v3004_v5  ;;  %v382_v29 = vpop.xlane.xlu1 %381 }
 0x377   :  { %3017 = vrcp.f32 %v382_v29 }
 0x378   :  { %1781 = vst.msk [vmem:[#allocation4 + $0x8] sm:$0xff] %vm349_vm4, %v391_v28 }
 0x379   :  { %v3014_v32 = vpop.eup %3013 }
 0x37a   :  { %v390_v35 = vmul.f32 %v3014_v32, %v3006_v9  ;;  %v662_v44 = vpop.permute.xlu1 %661 }
 0x37c   :  { %2610 = vmatprep.mubr.msk.f32.mxu1 %vm349_vm4, %v390_v35  ;;  %1780 = vst.msk [vmem:[#allocation4] sm:$0xff] %vm349_vm4, %v390_v35 }
 0x37d   :  { %v3016_v37 = vpop.eup %3015  ;;  %2611 = vmatmul.mubr.msk.f32.vlgmr.msra.gmra.mrb[8].mxu1 %vm349_vm4, %v391_v28 }
 0x37e   :  { %v393_v40 = vmul.f32 %v3016_v37, %v3008_v13  ;;  %2797 = vmatpush3.bf16.msra.mxu1 %v2794_v2 }
 0x37f   :  { %2806 = vmatprep.subr.msk.bf16.mxu1 %vm3283_vm2, %v2804_v39 }
 0x380   :  { %1789 = vst.msk [vmem:[#allocation4 + $0x48] sm:$0xff] %vm349_vm4, %v393_v40 }
 0x381   :  { %v3018_v41 = vpop.eup %3017 }
 0x382   :  { %v392_v42 = vmul.f32 %v3018_v41, %v3010_v21 }
 0x384   :  { %2617 = vmatprep.mubr.msk.f32.mxu1 %vm349_vm4, %v392_v42  ;;  %1788 = vst.msk [vmem:[#allocation4 + $0x40] sm:$0xff] %vm349_vm4, %v392_v42 }
 0x385   :  { %2618 = vmatmul.mubr.msk.f32.vlgmr.msra.gmra.mrb[10].mxu1 %vm349_vm4, %v393_v40 }
 0x386   :  { %2631 = vmatprep.mubr.msk.f32.mxu1 %vm172_vm1, %v660_v43 }
 0x387   :  { %2809 = vmatpush3.bf16.xpose.msk.msra.mxu1 %vm3283_vm2, %v2804_v39 }
 0x38e   :  { %2632 = vmatmul.mubr.msk.f32.vlgmr.msra.gmra.mrb[12].mxu1 %vm172_vm1, %v662_v44 }
 0x3b8   :  { %v2626_v45 = vpop.f32.mrb[0].mxu0 }
 0x3b9   :  { %v751_v46 = vsel %vm163_vm5, -1e+09, %v2626_v45  ;;  %v650_v47 = vpop.f32.mrb[1].mxu0 }
 0x3ba   :  { %v750_v48 = vsel %vm162_vm3, -1e+09, %v650_v47  ;;  %v757_v49 = vsel %vm349_vm4, %v751_v46, -inf }
 0x3bb   :  { %758 = vmax.xlane.f32.xlu1 %v757_v49  ;;  %v754_v50 = vsel %vm349_vm4, %v750_v48, -inf }
 0x3bc   :  { %755 = vmax.xlane.f32.xlu0 %v754_v50 }
 0x448   :  { %v759_v56 = vpop.xlane.xlu1 %758 }
 0x449   :  { %v756_v51 = vpop.xlane.xlu0 %755  ;;  %v767_v57 = vsub.f32 %v751_v46, %v759_v56 }
 0x44a   :  { %v766_v52 = vsub.f32 %v750_v48, %v756_v51 }
 0x44b   :  { %v772_v62 = vmul.f32 1.442695, %v767_v57 }
 0x44c   :  { %v770_v53 = vmul.f32 1.442695, %v766_v52 }
 0x44e   :  { %3019 = vpow2.f32 %v770_v53 }
 0x44f   :  { %3021 = vpow2.f32 %v772_v62 }
 0x450   :  { %v3379_v54 = vpop.f32.mrb[8].mxu1 }
 0x451   :  { %v3381_v55 = vpop.f32.mrb[9].mxu1 }
 0x458   :  { %v3020_v58 = vpop.eup %3019  ;;  %v3383_v59 = vpop.f32.mrb[10].mxu1 }
 0x459   :  { %v3385_v60 = vpop.f32.mrb[11].mxu1  ;;  %v778_v61 = vsel %vm349_vm4, %v3020_v58, 0.0  ;;  %v3022_v5 = vpop.eup %3021 }
 0x45a   :  { %779 = vadd.xlane.f32.xlu1 %v778_v61  ;;  %v781_v6 = vsel %vm349_vm4, %v3022_v5, 0.0 }
 0x461   :  { %v2633_v63 = vpop.f32.mrb[12].mxu1 }
 0x462   :  { %v741_v0 = vpop.f32.mrb[13].mxu1  ;;  %v753_v3 = vsel %vm165_vm6, -1e+09, %v2633_v63 }
 0x463   :  { %v752_v1 = vsel %vm164_vm7, -1e+09, %v741_v0  ;;  %v763_v4 = vsel %vm349_vm4, %v753_v3, -inf }
 0x464   :  { %v760_v2 = vsel %vm349_vm4, %v752_v1, -inf }
 0x465   :  { %761 = vmax.xlane.f32.xlu0 %v760_v2 }
 0x469   :  { %764 = vmax.xlane.f32.xlu0 %v763_v4 }
 0x46b   :  { %2954 = vrot.lane.b32.xlu1 %v3269_v15, %s3147_s18 }
 0x46d   :  { %782 = vadd.xlane.f32.xlu0 %v781_v6 }
 0x46f   :  { %2964 = vrot.lane.b32.xlu1 %v3269_v15, %s3148_s19 }
 0x473   :  { %2969 = vrot.lane.b32.xlu1 %v3278_v20, %s3148_s19 }
 0x477   :  { %974 = vrot.lane.b32.xlu1 %v3261_v12, %s3149_s20 }
 0x483   :  { %2959 = vrot.lane.b32.xlu0 %v3278_v20, %s3147_s18 }
 0x4e7   :  { %v780_v7 = vpop.xlane.xlu1 %779 }
 0x4e8   :  { %3023 = vrcp.f32 %v780_v7 }
 0x4eb   :  { %v2955_v8 = vpop.permute.xlu1 %2954 }
 0x4ec   :  { %v2957_v9 = vunpack.i.h.bf16 %v2955_v8  ;;  %v2956_v10 = vunpack.i.l.bf16 %v2955_v8 }
 0x4ee   :  { %v2810_v11 = vpack.c.bf16 %v2957_v9, %v2956_v10 }
 0x4ef   :  { %v2965_v13 = vpop.permute.xlu1 %2964 }
 0x4f0   :  { %v2967_v16 = vunpack.i.h.bf16 %v2965_v13  ;;  %v2966_v18 = vunpack.i.l.bf16 %v2965_v13  ;;  %2811 = vmatprep.subr.bf16.mxu0 %v2810_v11 }
 0x4f1   :  { %2813 = vmatpush3.bf16.msra.mxu0 %v2810_v11 }
 0x4f2   :  { %v3024_v21 = vpop.eup %3023  ;;  %v2818_v22 = vpack.c.bf16 %v2967_v16, %v2966_v18  ;;  %v762_v23 = vpop.xlane.xlu0 %761 }
 0x4f3   :  { %v768_v25 = vsub.f32 %v752_v1, %v762_v23  ;;  %v794_v26 = vmul.f32 %v3024_v21, %v3020_v58  ;;  %v2970_v34 = vpop.permute.xlu1 %2969 }
 0x4f4   :  { %2820 = vmatprep.subr.msk.bf16.mxu0 %vm3283_vm2, %v2818_v22  ;;  %v2972_v37 = vunpack.i.h.bf16 %v2970_v34  ;;  %v2971_v39 = vunpack.i.l.bf16 %v2970_v34 }
 0x4f5   :  { %v774_v27 = vmul.f32 1.442695, %v768_v25  ;;  %2638 = vmatprep.mubr.msk.f32.mxu0 %vm349_vm4, %v794_v26  ;;  %1782 = vst.msk [vmem:[#allocation4 + $0x10] sm:$0xff] %vm349_vm4, %v794_v26 }
 0x4f6   :  { %v765_v28 = vpop.xlane.xlu0 %764  ;;  %v2824_v45 = vpack.c.bf16 %v2972_v37, %v2971_v39 }
 0x4f7   :  { %3025 = vpow2.f32 %v774_v27  ;;  %v769_v29 = vsub.f32 %v753_v3, %v765_v28  ;;  %v975_v50 = vpop.permute.xlu1 %974 }
 0x4f9   :  { %v776_v32 = vmul.f32 1.442695, %v769_v29 }
 0x4fa   :  { %v783_v33 = vpop.xlane.xlu0 %782 }
 0x4fb   :  { %3027 = vpow2.f32 %v776_v32 }
 0x4fc   :  { %3029 = vrcp.f32 %v783_v33 }
 0x4fe   :  { %v2960_v35 = vpop.permute.xlu0 %2959 }
 0x4ff   :  { %v2962_v40 = vunpack.i.h.bf16 %v2960_v35  ;;  %v2961_v41 = vunpack.i.l.bf16 %v2960_v35 }
 0x501   :  { %v3026_v42 = vpop.eup %3025  ;;  %v2814_v43 = vpack.c.bf16 %v2962_v40, %v2961_v41 }
 0x502   :  { %v784_v44 = vsel %vm349_vm4, %v3026_v42, 0.0 }
 0x503   :  { %785 = vadd.xlane.f32.xlu1 %v784_v44  ;;  %2815 = vmatprep.subr.bf16.mxu1 %v2814_v43 }
 0x504   :  { %2817 = vmatpush3.bf16.msra.mxu1 %v2814_v43 }
 0x505   :  { %v3028_v46 = vpop.eup %3027  ;;  %2826 = vmatprep.subr.msk.bf16.mxu1 %vm3283_vm2, %v2824_v45 }
 0x506   :  { %v3030_v47 = vpop.eup %3029  ;;  %v787_v48 = vsel %vm349_vm4, %v3028_v46, 0.0 }
 0x507   :  { %v795_v49 = vmul.f32 %v3030_v47, %v3022_v5  ;;  %788 = vadd.xlane.f32.xlu0 %v787_v48 }
 0x509   :  { %1783 = vst.msk [vmem:[#allocation4 + $0x18] sm:$0xff] %vm349_vm4, %v795_v49  ;;  %2639 = vmatmul.mubr.msk.f32.vlgmr.msra.gmra.mrb[2].mxu0 %vm349_vm4, %v795_v49 }
 0x50a   :  { %2823 = vmatpush3.bf16.xpose.msk.msra.mxu0 %vm3283_vm2, %v2818_v22 }
 0x514   :  { %1065 = vrot.lane.b32.xlu1 %v3271_v17, %s3149_s20 }
 0x51d   :  { %972 = vrot.lane.b32.xlu0 %v3263_v14, %s3149_s20 }
 0x521   :  { %1063 = vrot.lane.b32.xlu0 %v3274_v19, %s3149_s20 }
 0x590   :  { %v786_v51 = vpop.xlane.xlu1 %785 }
 0x591   :  { %3031 = vrcp.f32 %v786_v51 }
 0x594   :  { %v789_v52 = vpop.xlane.xlu0 %788  ;;  %v1066_v63 = vpop.permute.xlu1 %1065 }
 0x595   :  { %3033 = vrcp.f32 %v789_v52 }
 0x598   :  { %v973_v53 = vpop.permute.xlu0 %972 }
 0x599   :  { %2652 = vmatprep.mubr.msk.f32.mxu0 %vm172_vm1, %v973_v53 }
 0x59a   :  { %2653 = vmatmul.mubr.msk.f32.vlgmr.msra.gmra.mrb[4].mxu0 %vm172_vm1, %v975_v50 }
 0x59b   :  { %v3032_v56 = vpop.eup %3031 }
 0x59c   :  { %v796_v57 = vmul.f32 %v3032_v56, %v3026_v42  ;;  %v1064_v62 = vpop.permute.xlu0 %1063 }
 0x59e   :  { %2645 = vmatprep.mubr.msk.f32.mxu1 %vm349_vm4, %v796_v57  ;;  %1790 = vst.msk [vmem:[#allocation4 + $0x50] sm:$0xff] %vm349_vm4, %v796_v57 }
 0x59f   :  { %v3034_v58 = vpop.eup %3033 }
 0x5a0   :  { %v797_v61 = vmul.f32 %v3034_v58, %v3028_v46 }
 0x5a2   :  { %1791 = vst.msk [vmem:[#allocation4 + $0x58] sm:$0xff] %vm349_vm4, %v797_v61  ;;  %2646 = vmatmul.mubr.msk.f32.vlgmr.msra.gmra.mrb[14].mxu1 %vm349_vm4, %v797_v61 }
 0x5a3   :  { %2829 = vmatpush3.bf16.xpose.msk.msra.mxu1 %vm3283_vm2, %v2824_v45  ;;  %2659 = vmatprep.mubr.msk.f32.mxu1 %vm172_vm1, %v1064_v62 }
 0x5aa   :  { %2660 = vmatmul.mubr.msk.f32.vlgmr.msra.gmra.mrb[16].mxu1 %vm172_vm1, %v1066_v63 }
 0x5dc   :  { %v3429_v0 = vpop.f32.mrb[2].mxu0 }
 0x5dd   :  { %v3431_v1 = vpop.f32.mrb[3].mxu0 }
 0x66d   :  { %v2654_v2 = vpop.f32.mrb[4].mxu0 }
 0x66e   :  { %v1155_v3 = vsel %vm163_vm5, -1e+09, %v2654_v2  ;;  %v1054_v4 = vpop.f32.mrb[5].mxu0 }
 0x66f   :  { %v1154_v5 = vsel %vm162_vm3, -1e+09, %v1054_v4  ;;  %v1161_v6 = vsel %vm349_vm4, %v1155_v3, -inf }
 0x670   :  { %1162 = vmax.xlane.f32.xlu1 %v1161_v6  ;;  %v1158_v7 = vsel %vm349_vm4, %v1154_v5, -inf }
 0x671   :  { %1159 = vmax.xlane.f32.xlu0 %v1158_v7 }
 0x675   :  { %v3439_v8 = vpop.f32.mrb[14].mxu1 }
 0x676   :  { %v3441_v9 = vpop.f32.mrb[15].mxu1 }
 0x67d   :  { %v2661_v10 = vpop.f32.mrb[16].mxu1 }
 0x67e   :  { %v1145_v11 = vpop.f32.mrb[17].mxu1  ;;  %v1157_v18 = vsel %vm165_vm6, -1e+09, %v2661_v10 }
 0x67f   :  { %v1156_v13 = vsel %vm164_vm7, -1e+09, %v1145_v11  ;;  %v1167_v21 = vsel %vm349_vm4, %v1157_v18, -inf }
 0x680   :  { %v1164_v16 = vsel %vm349_vm4, %v1156_v13, -inf }
 0x681   :  { %1165 = vmax.xlane.f32.xlu0 %v1164_v16 }
 0x685   :  { %1168 = vmax.xlane.f32.xlu0 %v1167_v21 }
 0x6fd   :  { %v1163_v22 = vpop.xlane.xlu1 %1162 }
 0x6fe   :  { %v1171_v23 = vsub.f32 %v1155_v3, %v1163_v22  ;;  %v1160_v25 = vpop.xlane.xlu0 %1159 }
 0x6ff   :  { %v1170_v26 = vsub.f32 %v1154_v5, %v1160_v25 }
 0x700   :  { %v1176_v27 = vmul.f32 1.442695, %v1171_v23 }
 0x701   :  { %v1174_v28 = vmul.f32 1.442695, %v1170_v26 }
 0x702   :  { %3035 = vpow2.f32 %v1176_v27 }
 0x703   :  { %3037 = vpow2.f32 %v1174_v28 }
 0x70c   :  { %v3036_v29 = vpop.eup %3035 }
 0x70d   :  { %v3038_v32 = vpop.eup %3037  ;;  %v1185_v33 = vsel %vm349_vm4, %v3036_v29, 0.0 }
 0x70e   :  { %1186 = vadd.xlane.f32.xlu0 %v1185_v33  ;;  %v1182_v34 = vsel %vm349_vm4, %v3038_v32, 0.0  ;;  %v1166_v35 = vpop.xlane.xlu0 %1165 }
 0x70f   :  { %1183 = vadd.xlane.f32.xlu1 %v1182_v34  ;;  %v1172_v41 = vsub.f32 %v1156_v13, %v1166_v35 }
 0x711   :  { %v1178_v42 = vmul.f32 1.442695, %v1172_v41 }
 0x712   :  { %v1169_v37 = vpop.xlane.xlu0 %1168 }
 0x713   :  { %v1173_v39 = vsub.f32 %v1157_v18, %v1169_v37 }
 0x715   :  { %v1180_v40 = vmul.f32 1.442695, %v1173_v39 }
 0x717   :  { %3039 = vpow2.f32 %v1180_v40 }
 0x718   :  { %3041 = vpow2.f32 %v1178_v42 }
 0x720   :  { %2974 = vrot.lane.b32.xlu1 %v3269_v15, %s3150_s21 }
 0x721   :  { %v3040_v43 = vpop.eup %3039 }
 0x722   :  { %v1191_v44 = vsel %vm349_vm4, %v3040_v43, 0.0  ;;  %v3042_v45 = vpop.eup %3041 }
 0x723   :  { %v1188_v46 = vsel %vm349_vm4, %v3042_v45, 0.0 }
 0x724   :  { %2984 = vrot.lane.b32.xlu1 %v3269_v15, %s3151_s2  ;;  %2979 = vrot.lane.b32.xlu0 %v3278_v20, %s3150_s21 }
 0x728   :  { %2989 = vrot.lane.b32.xlu1 %v3278_v20, %s3151_s2 }
 0x72c   :  { %1378 = vrot.lane.b32.xlu1 %v3261_v12, %s3152_s22 }
 0x743   :  { %1192 = vadd.xlane.f32.xlu0 %v1191_v44 }
 0x750   :  { %1189 = vadd.xlane.f32.xlu1 %v1188_v46 }
 0x759   :  { %1376 = vrot.lane.b32.xlu0 %v3263_v14, %s3152_s22 }
 0x75d   :  { %1467 = vrot.lane.b32.xlu0 %v3274_v19, %s3152_s22 }
 0x761   :  { %1469 = vrot.lane.b32.xlu1 %v3271_v17, %s3152_s22 }
 0x79b   :  { %v1187_v12 = vpop.xlane.xlu0 %1186 }
 0x79c   :  { %3043 = vrcp.f32 %v1187_v12  ;;  %v1184_v47 = vpop.xlane.xlu1 %1183 }
 0x79d   :  { %3045 = vrcp.f32 %v1184_v47 }
 0x79f   :  { %v2980_v48 = vpop.permute.xlu0 %2979 }
 0x7a0   :  { %v2982_v49 = vunpack.i.h.bf16 %v2980_v48  ;;  %v2981_v50 = vunpack.i.l.bf16 %v2980_v48  ;;  %v2975_v51 = vpop.permute.xlu1 %2974 }
 0x7a1   :  { %v2977_v52 = vunpack.i.h.bf16 %v2975_v51  ;;  %v2976_v53 = vunpack.i.l.bf16 %v2975_v51 }
 0x7a2   :  { %v2834_v56 = vpack.c.bf16 %v2982_v49, %v2981_v50 }
 0x7a3   :  { %v2830_v57 = vpack.c.bf16 %v2977_v52, %v2976_v53 }
 0x7a4   :  { %v2985_v58 = vpop.permute.xlu1 %2984  ;;  %2835 = vmatprep.subr.bf16.mxu1 %v2834_v56 }
 0x7a5   :  { %v2987_v61 = vunpack.i.h.bf16 %v2985_v58  ;;  %v2986_v14 = vunpack.i.l.bf16 %v2985_v58  ;;  %2831 = vmatprep.subr.bf16.mxu0 %v2830_v57  ;;  %2837 = vmatpush3.bf16.msra.mxu1 %v2834_v56 }
 0x7a6   :  { %v3044_v19 = vpop.eup %3043  ;;  %2833 = vmatpush3.bf16.msra.mxu0 %v2830_v57 }
 0x7a7   :  { %v3046_v17 = vpop.eup %3045  ;;  %v1199_v62 = vmul.f32 %v3044_v19, %v3036_v29  ;;  %v2838_v63 = vpack.c.bf16 %v2987_v61, %v2986_v14 }
 0x7a8   :  { %v2990_v2 = vpop.permute.xlu1 %2989  ;;  %v1198_v3 = vmul.f32 %v3046_v17, %v3038_v32 }
 0x7a9   :  { %1785 = vst.msk [vmem:[#allocation4 + $0x28] sm:$0xff] %vm349_vm4, %v1199_v62  ;;  %v2992_v4 = vunpack.i.h.bf16 %v2990_v2  ;;  %v2991_v5 = vunpack.i.l.bf16 %v2990_v2  ;;  %2840 = vmatprep.subr.msk.bf16.mxu0 %vm3283_vm2, %v2838_v63 }
 0x7aa   :  { %2666 = vmatprep.mubr.msk.f32.mxu0 %vm349_vm4, %v1198_v3  ;;  %1784 = vst.msk [vmem:[#allocation4 + $0x20] sm:$0xff] %vm349_vm4, %v1198_v3 }
 0x7ab   :  { %v2844_v6 = vpack.c.bf16 %v2992_v4, %v2991_v5  ;;  %2667 = vmatmul.mubr.msk.f32.vlgmr.msra.gmra.mrb[6].mxu0 %vm349_vm4, %v1199_v62 }
 0x7ac   :  { %v1379_v11 = vpop.permute.xlu1 %1378 }
 0x7ad   :  { %2846 = vmatprep.subr.msk.bf16.mxu1 %vm3283_vm2, %v2844_v6 }
 0x7af   :  { %2843 = vmatpush3.bf16.xpose.msk.msra.mxu0 %vm3283_vm2, %v2838_v63 }
 0x7d0   :  { %v1193_v7 = vpop.xlane.xlu0 %1192 }
 0x7d1   :  { %3047 = vrcp.f32 %v1193_v7 }
 0x7d4   :  { %v1377_v10 = vpop.permute.xlu0 %1376 }
 0x7d5   :  { %2680 = vmatprep.mubr.msk.f32.mxu0 %vm172_vm1, %v1377_v10 }
 0x7d6   :  { %2681 = vmatmul.mubr.msk.f32.vlgmr.msra.gmra.mrb[8].mxu0 %vm172_vm1, %v1379_v11 }
 0x7d8   :  { %v1468_v23 = vpop.permute.xlu0 %1467 }
 0x7db   :  { %v3048_v13 = vpop.eup %3047 }
 0x7dc   :  { %v1201_v16 = vmul.f32 %v3048_v13, %v3040_v43 }
 0x7dd   :  { %v1190_v18 = vpop.xlane.xlu1 %1189 }
 0x7de   :  { %1793 = vst.msk [vmem:[#allocation4 + $0x68] sm:$0xff] %vm349_vm4, %v1201_v16  ;;  %3049 = vrcp.f32 %v1190_v18 }
 0x7e1   :  { %v1470_v25 = vpop.permute.xlu1 %1469 }
 0x7e8   :  { %v3050_v21 = vpop.eup %3049 }
 0x7e9   :  { %v1200_v22 = vmul.f32 %v3050_v21, %v3042_v45 }
 0x7eb   :  { %2673 = vmatprep.mubr.msk.f32.mxu1 %vm349_vm4, %v1200_v22  ;;  %1792 = vst.msk [vmem:[#allocation4 + $0x60] sm:$0xff] %vm349_vm4, %v1200_v22 }
 0x7ec   :  { %2674 = vmatmul.mubr.msk.f32.vlgmr.msra.gmra.mrb[18].mxu1 %vm349_vm4, %v1201_v16 }
 0x7ed   :  { %2849 = vmatpush3.bf16.xpose.msk.msra.mxu1 %vm3283_vm2, %v2844_v6  ;;  %2687 = vmatprep.mubr.msk.f32.mxu1 %vm172_vm1, %v1468_v23  ;;  %v1857_v23 = vld [vmem:[%s3726_s4] sm:$0xff] }
 0x7f4   :  { %2688 = vmatmul.mubr.msk.f32.vlgmr.msra.gmra.mrb[20].mxu1 %vm172_vm1, %v1470_v25  ;;  %v1858_v25 = vld [vmem:[%s3726_s4 + $0x8] sm:$0xff] }
 0x87e   :  { %v2668_v26 = vpop.f32.mrb[6].mxu0 }
 0x87f   :  { %v1280_v27 = vpop.f32.mrb[7].mxu0 }
 0x8a9   :  { %v2682_v28 = vpop.f32.mrb[8].mxu0 }
 0x8aa   :  { %v1559_v29 = vsel %vm163_vm5, -1e+09, %v2682_v28  ;;  %v1458_v32 = vpop.f32.mrb[9].mxu0  ;;  %v1860_v28 = vld [vmem:[%s3726_s4 + $0x18] sm:$0xff] }
 0x8ab   :  { %v1558_v33 = vsel %vm162_vm3, -1e+09, %v1458_v32  ;;  %v1565_v34 = vsel %vm349_vm4, %v1559_v29, -inf }
 0x8ac   :  { %1566 = vmax.xlane.f32.xlu1 %v1565_v34  ;;  %v1562_v24 = vsel %vm349_vm4, %v1558_v33, -inf }
 0x8ad   :  { %1563 = vmax.xlane.f32.xlu0 %v1562_v24 }
 0x8bf   :  { %v3487_v35 = vpop.f32.mrb[18].mxu1 }
 0x8c0   :  { %v3489_v37 = vpop.f32.mrb[19].mxu1 }
 0x8c7   :  { %v2689_v39 = vpop.f32.mrb[20].mxu1 }
 0x8c8   :  { %v1549_v40 = vpop.f32.mrb[21].mxu1  ;;  %v1561_v30 = vsel %vm165_vm6, -1e+09, %v2689_v39 }
 0x8c9   :  { %v1560_v31 = vsel %vm164_vm7, -1e+09, %v1549_v40  ;;  %v1571_v42 = vsel %vm349_vm4, %v1561_v30, -inf }
 0x8ca   :  { %v1568_v41 = vsel %vm349_vm4, %v1560_v31, -inf }
 0x8cb   :  { %1569 = vmax.xlane.f32.xlu0 %v1568_v41 }
 0x8cf   :  { %1572 = vmax.xlane.f32.xlu0 %v1571_v42 }
 0x939   :  { %v1567_v43 = vpop.xlane.xlu1 %1566 }
 0x93a   :  { %v1575_v44 = vsub.f32 %v1559_v29, %v1567_v43  ;;  %v1564_v45 = vpop.xlane.xlu0 %1563 }
 0x93b   :  { %v1574_v46 = vsub.f32 %v1558_v33, %v1564_v45 }
 0x93c   :  { %v1580_v12 = vmul.f32 1.442695, %v1575_v44 }
 0x93d   :  { %v1578_v47 = vmul.f32 1.442695, %v1574_v46 }
 0x93e   :  { %3051 = vpow2.f32 %v1580_v12 }
 0x93f   :  { %3053 = vpow2.f32 %v1578_v47 }
 0x948   :  { %v3052_v48 = vpop.eup %3051 }
 0x949   :  { %v3054_v38 = vpop.eup %3053  ;;  %v1589_v49 = vsel %vm349_vm4, %v3052_v48, 0.0 }
 0x94a   :  { %1590 = vadd.xlane.f32.xlu0 %v1589_v49  ;;  %v1586_v36 = vsel %vm349_vm4, %v3054_v38, 0.0 }
 0x94b   :  { %1587 = vadd.xlane.f32.xlu1 %v1586_v36 }
 0x958   :  { %v1570_v50 = vpop.xlane.xlu0 %1569 }
 0x959   :  { %v1576_v51 = vsub.f32 %v1560_v31, %v1570_v50 }
 0x95b   :  { %v1582_v52 = vmul.f32 1.442695, %v1576_v51 }
 0x95c   :  { %v1573_v53 = vpop.xlane.xlu0 %1572 }
 0x95d   :  { %3055 = vpow2.f32 %v1582_v52  ;;  %v1577_v56 = vsub.f32 %v1561_v30, %v1573_v53 }
 0x95f   :  { %v1584_v57 = vmul.f32 1.442695, %v1577_v56 }
 0x961   :  { %3057 = vpow2.f32 %v1584_v57  ;;  %v3091_v57 = vld [vmem:[%s3722_s0 + $0x8] sm:$0xff] }
 0x967   :  { %v3056_v58 = vpop.eup %3055 }
 0x968   :  { %v1592_v61 = vsel %vm349_vm4, %v3056_v58, 0.0 }
 0x969   :  { %1593 = vadd.xlane.f32.xlu1 %v1592_v61  ;;  %v3092_v61 = vld [vmem:[%s3722_s0] sm:$0xff] }
 0x96b   :  { %v3058_v14 = vpop.eup %3057 }
 0x96c   :  { %v1595_v19 = vsel %vm349_vm4, %v3058_v14, 0.0 }
 0x96d   :  { %1596 = vadd.xlane.f32.xlu0 %v1595_v19 }
 0x97a   :  { %2994 = vrot.lane.b32.xlu1 %v3269_v15, %s3153_s23 }
 0x97e   :  { %1800 = vrot.lane.b32.xlu1 %v3431_v1, %s3154_s24 }
 0x982   :  { %1802 = vrot.lane.b32.xlu1 %v3429_v0, %s3154_s24 }
 0x983   :  { %2999 = vrot.lane.b32.xlu0 %v3278_v20, %s3153_s23 }
 0x986   :  { %1818 = vrot.lane.b32.xlu1 %v2668_v26, %s3155_s25  ;;  %v1859_v26 = vld [vmem:[%s3726_s4 + $0x10] sm:$0xff] }
 0x987   :  { %1816 = vrot.lane.b32.xlu0 %v1280_v27, %s3155_s25  ;;  %v2858_v27 = vpack.c.bf16 %v1858_v25, %v1857_v23  ;;  %v2862_v29 = vpack.c.bf16 %v1860_v28, %v1859_v26 }
 0x9d7   :  { %v1591_v17 = vpop.xlane.xlu0 %1590 }
 0x9d8   :  { %3059 = vrcp.f32 %v1591_v17  ;;  %v1588_v62 = vpop.xlane.xlu1 %1587 }
 0x9d9   :  { %3061 = vrcp.f32 %v1588_v62 }
 0x9e2   :  { %v3060_v63 = vpop.eup %3059 }
 0x9e3   :  { %v3062_v15 = vpop.eup %3061  ;;  %v1603_v2 = vmul.f32 %v3060_v63, %v3052_v48 }
 0x9e4   :  { %v1602_v3 = vmul.f32 %v3062_v15, %v3054_v38 }
 0x9e5   :  { %1787 = vst.msk [vmem:[#allocation4 + $0x38] sm:$0xff] %vm349_vm4, %v1603_v2 }
 0x9e6   :  { %2694 = vmatprep.mubr.msk.f32.mxu0 %vm349_vm4, %v1602_v3  ;;  %1786 = vst.msk [vmem:[#allocation4 + $0x30] sm:$0xff] %vm349_vm4, %v1602_v3  ;;  %v3093_v3 = vld [vmem:[%s3722_s0 + $0x10] sm:$0xff] }
 0x9f6   :  { %v1594_v20 = vpop.xlane.xlu1 %1593 }
 0x9f7   :  { %3063 = vrcp.f32 %v1594_v20 }
 0x9fa   :  { %v2995_v0 = vpop.permute.xlu1 %2994  ;;  %v1597_v1 = vpop.xlane.xlu0 %1596 }
 0x9fb   :  { %v2997_v4 = vunpack.i.h.bf16 %v2995_v0  ;;  %v2996_v5 = vunpack.i.l.bf16 %v2995_v0  ;;  %3065 = vrcp.f32 %v1597_v1  ;;  %v3094_v1 = vld [vmem:[%s3722_s0 + $0x18] sm:$0xff] }
 0x9fd   :  { %v2850_v6 = vpack.c.bf16 %v2997_v4, %v2996_v5 }
 0x9fe   :  { %v3000_v7 = vpop.permute.xlu0 %2999  ;;  %v1801_v39 = vpop.permute.xlu1 %1800 }
 0x9ff   :  { %v3002_v10 = vunpack.i.h.bf16 %v3000_v7  ;;  %v3001_v11 = vunpack.i.l.bf16 %v3000_v7  ;;  %2851 = vmatprep.subr.bf16.mxu0 %v2850_v6 }
 0xa00   :  { %2853 = vmatpush3.bf16.msra.mxu0 %v2850_v6 }
 0xa01   :  { %v3064_v13 = vpop.eup %3063  ;;  %v2854_v16 = vpack.c.bf16 %v3002_v10, %v3001_v11  ;;  %2859 = vmatprep.subr.bf16.mxu0 %v2858_v27 }
 0xa02   :  { %v1604_v18 = vmul.f32 %v3064_v13, %v3056_v58  ;;  %v1803_v40 = vpop.permute.xlu1 %1802  ;;  %v1817_v41 = vpop.permute.xlu0 %1816 }
 0xa03   :  { %2695 = vmatmul.mubr.msk.f32.vlgmr.msra.gmra.mrb[10].mxu0 %vm349_vm4, %v1603_v2  ;;  %2855 = vmatprep.subr.bf16.mxu1 %v2854_v16 }
 0xa04   :  { %2857 = vmatpush3.bf16.msra.mxu1 %v2854_v16  ;;  %2701 = vmatprep.mubr.msk.f32.mxu1 %vm349_vm4, %v1604_v18  ;;  %1794 = vst.msk [vmem:[#allocation4 + $0x70] sm:$0xff] %vm349_vm4, %v1604_v18 }
 0xa05   :  { %v3066_v21 = vpop.eup %3065  ;;  %2861 = vmatpush3.bf16.msra.mxu0 %v2858_v27 }
 0xa06   :  { %v1605_v22 = vmul.f32 %v3066_v21, %v3058_v14  ;;  %2863 = vmatprep.subr.bf16.mxu0 %v2862_v29  ;;  %v1819_v31 = vpop.permute.xlu1 %1818 }
 0xa08   :  { %1795 = vst.msk [vmem:[#allocation4 + $0x78] sm:$0xff] %vm349_vm4, %v1605_v22  ;;  %2702 = vmatmul.mubr.msk.f32.vlgmr.msra.gmra.mrb[22].mxu1 %vm349_vm4, %v1605_v22 }
 0xa09   :  { %2865 = vmatpush3.bf16.msra.mxu0 %v2862_v29 }
 0xad6   :  { %v2696_v32 = vpop.f32.mrb[10].mxu0 }
 0xad7   :  { %1834 = vrot.lane.b32.xlu1 %v2696_v32, %s3156_s1  ;;  %v1684_v33 = vpop.f32.mrb[11].mxu0 }
 0xad8   :  { %1832 = vrot.lane.b32.xlu0 %v1684_v33, %s3156_s1 }
 0xadb   :  { %1806 = vrot.lane.b32.xlu1 %v3439_v8, %s3154_s24  ;;  %v2703_v34 = vpop.f32.mrb[22].mxu1  ;;  %v1844_v8 = vsel %vm172_vm1, %v3381_v55, %v1801_v39 }
 0xadc   :  { %1804 = vrot.lane.b32.xlu0 %v3441_v9, %s3154_s24  ;;  %v1771_v24 = vpop.f32.mrb[23].mxu1  ;;  %v1845_v9 = vsel %vm172_vm1, %v3379_v54, %v1803_v40  ;;  %v1848_v42 = vsel %vm349_vm4, %v1844_v8, %v1817_v41  ;;  %v2044_v40 = vld [vmem:[%s3730_s8] sm:$0xff]  ;;  %v2046_v8 = vld [vmem:[%s3730_s8 + $0x10] sm:$0xff] }
 0xadd   :  { %v1849_v43 = vsel %vm349_vm4, %v1845_v9, %v1819_v31  ;;  %v2045_v31 = vld [vmem:[%s3730_s8 + $0x8] sm:$0xff] }
 0xade   :  { %v2866_v41 = vpack.c.bf16 %v2045_v31, %v2044_v40 }
 0xadf   :  { %1822 = vrot.lane.b32.xlu1 %v3487_v35, %s3155_s25 }
 0xae0   :  { %1820 = vrot.lane.b32.xlu0 %v3489_v37, %s3155_s25  ;;  %2867 = vmatprep.subr.bf16.mxu1 %v2866_v41 }
 0xae1   :  { %2869 = vmatpush3.bf16.msra.mxu1 %v2866_v41 }
 0xae3   :  { %1838 = vrot.lane.b32.xlu1 %v2703_v34, %s3156_s1 }
 0xae4   :  { %1836 = vrot.lane.b32.xlu0 %v1771_v24, %s3156_s1 }
 0xb49   :  { %v1835_v30 = vpop.permute.xlu1 %1834 }
 0xb4a   :  { %v1833_v35 = vpop.permute.xlu0 %1832  ;;  %v1854_v44 = vsel %vm1852_vm8, %v1849_v43, %v1835_v30  ;;  %v2047_v30 = vld [vmem:[%s3730_s8 + $0x18] sm:$0xff] }
 0xb4b   :  { %v1853_v37 = vsel %vm1852_vm8, %v1848_v42, %v1833_v35  ;;  %v2870_v9 = vpack.c.bf16 %v2047_v30, %v2046_v8 }
 0xb4c   :  { %2712 = vmatprep.mubr.msk.f32.mxu0 %vm60_vm0, %v1853_v37 }
 0xb4d   :  { %v1807_v45 = vpop.permute.xlu1 %1806  ;;  %2713 = vmatmul.mubr.msk.f32.vlgmr.msra.gmra.mrb[12].mxu0 %vm60_vm0, %v1854_v44  ;;  %2871 = vmatprep.subr.bf16.mxu1 %v2870_v9 }
 0xb4e   :  { %v1805_v46 = vpop.permute.xlu0 %1804  ;;  %v1847_v48 = vsel %vm172_vm1, %v3383_v59, %v1807_v45  ;;  %2873 = vmatpush3.bf16.msra.mxu1 %v2870_v9 }
 0xb4f   :  { %v1846_v54 = vsel %vm172_vm1, %v3385_v60, %v1805_v46  ;;  %v2457_v60 = vld [vmem:[%s3727_s5] ss:$0 sm:$0xff] }
 0xb51   :  { %v1823_v55 = vpop.permute.xlu1 %1822 }
 0xb52   :  { %v1821_v12 = vpop.permute.xlu0 %1820  ;;  %v1851_v36 = vsel %vm349_vm4, %v1847_v48, %v1823_v55 }
 0xb53   :  { %v1850_v38 = vsel %vm349_vm4, %v1846_v54, %v1821_v12  ;;  %v2462_v54 = vld [vmem:[%s3728_s6] ss:$0 sm:$0xff] }
 0xb55   :  { %v1839_v47 = vpop.permute.xlu1 %1838 }
 0xb56   :  { %v1837_v49 = vpop.permute.xlu0 %1836  ;;  %v1856_v51 = vsel %vm1852_vm8, %v1851_v36, %v1839_v47 }
 0xb57   :  { %v1855_v50 = vsel %vm1852_vm8, %v1850_v38, %v1837_v49 }
 0xb58   :  { %2715 = vmatprep.mubr.msk.f32.mxu0 %vm60_vm0, %v1855_v50 }
 0xb59   :  { %2716 = vmatmul.mubr.msk.f32.gmra.mrb[14].mxu0 %vm60_vm0, %v1856_v51  ;;  %v2463_v51 = vld [vmem:[%s3729_s7] ss:$0 sm:$0xff] }
 0xc20   :  { %v2714_v52 = vpop.f32.mrb[12].mxu0 }
 0xc21   :  { %v1952_v53 = vadd.f32 %v2714_v52, %v2457_v60  ;;  %v1946_v59 = vpop.f32.mrb[13].mxu0 }
 0xc22   :  { %v1947_v56 = vadd.f32 %v2457_v60, %v1946_v59 }
 0xc23   :  { %v1966_v58 = vadd.f32 %v3091_v57, %v1952_v53 }
 0xc24   :  { %v1965_v14 = vadd.f32 %v3092_v61, %v1947_v56 }
 0xc25   :  { %v1972_v19 = vsel %vm60_vm0, %v1966_v58, 0.0 }
 0xc26   :  { %1973 = vadd.xlane.f32.xlu1 %v1972_v19  ;;  %v1969_v17 = vsel %vm60_vm0, %v1965_v14, 0.0 }
 0xc27   :  { %1970 = vadd.xlane.f32.xlu0 %v1969_v17 }
 0xc2c   :  { %v2717_v62 = vpop.f32.mrb[14].mxu0 }
 0xc2d   :  { %v1956_v63 = vpop.f32.mrb[15].mxu0  ;;  %v1962_v15 = vadd.f32 %v2717_v62, %v2457_v60 }
 0xc2e   :  { %v1957_v2 = vadd.f32 %v2457_v60, %v1956_v63 }
 0xc2f   :  { %v1968_v4 = vadd.f32 %v3094_v1, %v1962_v15  ;;  %v2260_v15 = vld [vmem:[%s3732_s10] sm:$0xff] }
 0xc30   :  { %v1967_v20 = vadd.f32 %v3093_v3, %v1957_v2  ;;  %v2261_v2 = vld [vmem:[%s3732_s10 + $0x8] sm:$0xff] }
 0xc31   :  { %v1978_v5 = vsel %vm60_vm0, %v1968_v4, 0.0  ;;  %v2874_v3 = vpack.c.bf16 %v2261_v2, %v2260_v15 }
 0xc32   :  { %v1975_v0 = vsel %vm60_vm0, %v1967_v20, 0.0 }
 0xc33   :  { %1976 = vadd.xlane.f32.xlu0 %v1975_v0  ;;  %2875 = vmatprep.subr.bf16.mxu0 %v2874_v3  ;;  %v2263_v0 = vld [vmem:[%s3732_s10 + $0x18] sm:$0xff] }
 0xc34   :  { %2877 = vmatpush3.bf16.msra.mxu0 %v2874_v3 }
 0xc37   :  { %1979 = vadd.xlane.f32.xlu0 %v1978_v5  ;;  %v2265_v5 = vld [vmem:[%s3732_s10 + $0x28] sm:$0xff] }
 0xcb3   :  { %v1974_v6 = vpop.xlane.xlu1 %1973 }
 0xcb4   :  { %v1983_v7 = vmul.f32 0.03125, %v1974_v6  ;;  %v1971_v10 = vpop.xlane.xlu0 %1970 }
 0xcb5   :  { %v1982_v11 = vmul.f32 0.03125, %v1971_v10  ;;  %v2267_v10 = vld [vmem:[%s3732_s10 + $0x38] sm:$0xff] }
 0xcb6   :  { %v1987_v13 = vsub.f32 %v1966_v58, %v1983_v7  ;;  %v2266_v7 = vld [vmem:[%s3732_s10 + $0x30] sm:$0xff] }
 0xcb7   :  { %v1986_v16 = vsub.f32 %v1965_v14, %v1982_v11  ;;  %v2886_v11 = vpack.c.bf16 %v2267_v10, %v2266_v7 }
 0xcb8   :  { %v1991_v18 = vmul.f32 %v1987_v13, %v1987_v13 }
 0xcb9   :  { %v1990_v21 = vmul.f32 %v1986_v16, %v1986_v16 }
 0xcba   :  { %v1997_v22 = vsel %vm60_vm0, %v1991_v18, 0.0 }
 0xcbb   :  { %1998 = vadd.xlane.f32.xlu0 %v1997_v22  ;;  %v1994_v23 = vsel %vm60_vm0, %v1990_v21, 0.0  ;;  %v2270_v21 = vld [vmem:[%s3732_s10 + $0x50] sm:$0xff]  ;;  %v2271_v22 = vld [vmem:[%s3732_s10 + $0x58] sm:$0xff] }
 0xcbc   :  { %1995 = vadd.xlane.f32.xlu1 %v1994_v23  ;;  %v2894_v23 = vpack.c.bf16 %v2271_v22, %v2270_v21 }
 0xcc0   :  { %v1977_v25 = vpop.xlane.xlu0 %1976 }
 0xcc1   :  { %v1984_v26 = vmul.f32 0.03125, %v1977_v25  ;;  %v2272_v25 = vld [vmem:[%s3732_s10 + $0x60] sm:$0xff] }
 0xcc3   :  { %v1988_v27 = vsub.f32 %v1967_v20, %v1984_v26  ;;  %v2262_v20 = vld [vmem:[%s3732_s10 + $0x10] sm:$0xff]  ;;  %v2273_v26 = vld [vmem:[%s3732_s10 + $0x68] sm:$0xff] }
 0xcc4   :  { %v1980_v28 = vpop.xlane.xlu0 %1979  ;;  %v2878_v1 = vpack.c.bf16 %v2263_v0, %v2262_v20 }
 0xcc5   :  { %v1985_v29 = vmul.f32 0.03125, %v1980_v28  ;;  %v1992_v32 = vmul.f32 %v1988_v27, %v1988_v27  ;;  %v2274_v28 = vld [vmem:[%s3732_s10 + $0x70] sm:$0xff] }
 0xcc6   :  { %2879 = vmatprep.subr.bf16.mxu0 %v2878_v1 }
 0xcc7   :  { %v1989_v33 = vsub.f32 %v1968_v4, %v1985_v29  ;;  %v2000_v34 = vsel %vm60_vm0, %v1992_v32, 0.0  ;;  %2881 = vmatpush3.bf16.msra.mxu0 %v2878_v1  ;;  %v2264_v4 = vld [vmem:[%s3732_s10 + $0x20] sm:$0xff]  ;;  %v2275_v29 = vld [vmem:[%s3732_s10 + $0x78] sm:$0xff] }
 0xcc8   :  { %2001 = vadd.xlane.f32.xlu1 %v2000_v34  ;;  %v2882_v6 = vpack.c.bf16 %v2265_v5, %v2264_v4  ;;  %v2902_v32 = vpack.c.bf16 %v2275_v29, %v2274_v28 }
 0xcc9   :  { %v1993_v24 = vmul.f32 %v1989_v33, %v1989_v33 }
 0xcca   :  { %2883 = vmatprep.subr.bf16.mxu0 %v2882_v6 }
 0xccb   :  { %v2003_v39 = vsel %vm60_vm0, %v1993_v24, 0.0  ;;  %2885 = vmatpush3.bf16.msra.mxu0 %v2882_v6 }
 0xccc   :  { %2004 = vadd.xlane.f32.xlu0 %v2003_v39  ;;  %2887 = vmatprep.subr.bf16.mxu0 %v2886_v11 }
 0xccf   :  { %2889 = vmatpush3.bf16.msra.mxu0 %v2886_v11 }
 0xd48   :  { %v1999_v42 = vpop.xlane.xlu0 %1998 }
 0xd49   :  { %v2007_v35 = vmul.f32 0.03125, %v1999_v42  ;;  %v1996_v43 = vpop.xlane.xlu1 %1995 }
 0xd4a   :  { %v2006_v37 = vmul.f32 0.03125, %v1996_v43 }
 0xd4b   :  { %v2011_v44 = vadd.f32 1e-05, %v2007_v35 }
 0xd4c   :  { %v2010_v45 = vadd.f32 1e-05, %v2006_v37 }
 0xd4d   :  { %3067 = vrsqrt.f32 %v2011_v44 }
 0xd4e   :  { %3069 = vrsqrt.f32 %v2010_v45 }
 0xd55   :  { %v2002_v46 = vpop.xlane.xlu1 %2001 }
 0xd56   :  { %v2008_v55 = vmul.f32 0.03125, %v2002_v46 }
 0xd57   :  { %v3068_v12 = vpop.eup %3067 }
 0xd58   :  { %v3070_v47 = vpop.eup %3069  ;;  %v2019_v48 = vmul.f32 %v3068_v12, %v1987_v13  ;;  %v2012_v38 = vadd.f32 1e-05, %v2008_v55  ;;  %v2268_v13 = vld [vmem:[%s3732_s10 + $0x40] sm:$0xff] }
 0xd59   :  { %v2005_v49 = vpop.xlane.xlu0 %2004  ;;  %v2018_v36 = vmul.f32 %v3070_v47, %v1986_v16  ;;  %v2269_v16 = vld [vmem:[%s3732_s10 + $0x48] sm:$0xff] }
 0xd5a   :  { %3071 = vrsqrt.f32 %v2012_v38  ;;  %v2009_v50 = vmul.f32 0.03125, %v2005_v49  ;;  %v2030_v60 = vmul.f32 %v2462_v54, %v2019_v48  ;;  %v2890_v18 = vpack.c.bf16 %v2269_v16, %v2268_v13 }
 0xd5b   :  { %v2029_v52 = vmul.f32 %v2462_v54, %v2018_v36 }
 0xd5c   :  { %v2013_v53 = vadd.f32 1e-05, %v2009_v50  ;;  %v2041_v56 = vadd.f32 %v2463_v51, %v2030_v60  ;;  %2891 = vmatprep.subr.bf16.mxu0 %v2890_v18 }
 0xd5d   :  { %v2040_v59 = vadd.f32 %v2463_v51, %v2029_v52  ;;  %2893 = vmatpush3.bf16.msra.mxu0 %v2890_v18 }
 0xd5e   :  { %3073 = vrsqrt.f32 %v2013_v53  ;;  %2895 = vmatprep.subr.bf16.mxu0 %v2894_v23 }
 0xd5f   :  { %2726 = vmatprep.mubr.msk.f32.mxu1 %vm60_vm0, %v2040_v59 }
 0xd60   :  { %2727 = vmatmul.mubr.msk.f32.vlgmr.msra.gmra.mrb[24].mxu1 %vm60_vm0, %v2041_v56 }
 0xd61   :  { %2897 = vmatpush3.bf16.msra.mxu0 %v2894_v23 }
 0xd64   :  { %v3072_v57 = vpop.eup %3071 }
 0xd65   :  { %v2020_v58 = vmul.f32 %v3072_v57, %v1988_v27  ;;  %v2898_v27 = vpack.c.bf16 %v2273_v26, %v2272_v25 }
 0xd67   :  { %v2031_v61 = vmul.f32 %v2462_v54, %v2020_v58  ;;  %2899 = vmatprep.subr.bf16.mxu0 %v2898_v27 }
 0xd68   :  { %v3074_v14 = vpop.eup %3073  ;;  %2901 = vmatpush3.bf16.msra.mxu0 %v2898_v27 }
 0xd69   :  { %v2042_v19 = vadd.f32 %v2463_v51, %v2031_v61  ;;  %v2021_v17 = vmul.f32 %v3074_v14, %v1989_v33  ;;  %2903 = vmatprep.subr.bf16.mxu0 %v2902_v32  ;;  %v2464_v33 = vld [vmem:[%s3731_s9] ss:$0 sm:$0xff]  ;;  %s3157_s9 = smov [#allocation4]  }
 0xd6a   :  { %s2389_s10 = sshll.u32 %s3157_s9, 4  ;;  %s2390_s10 = int_to_ptr.vmem [resolvable:$true] %s2389_s10 }
 0xd6b   :  { %2729 = vmatprep.mubr.msk.f32.mxu1 %vm60_vm0, %v2042_v19  ;;  %v2032_v62 = vmul.f32 %v2462_v54, %v2021_v17  ;;  %s3095_s5 = scalar_lea.vmem %s2390_s10, 2048  ;;  %p3100_p1 = scmp.lt.s32.totalorder %s2390_s10, %s2390_s10 }
 0xd6c   :  { %2905 = vmatpush3.bf16.msra.mxu0 %v2902_v32  ;;  %p3096_p0 = scmp.ne.s32.totalorder %s2390_s10, %s3095_s5  ;;  %p3101_p2 = scmp.lt.s32.totalorder %s3095_s5, %s3095_s5 }
 0xd6d   :  { %v2043_v63 = vadd.f32 %v2463_v51, %v2032_v62 }
 0xd6e   :  { %p3102_p3 = por %p3101_p2, %p3100_p1 }
 0xd6f   :  { %2730 = vmatmul.mubr.msk.f32.gmra.mrb[26].mxu1 %vm60_vm0, %v2043_v63 }
 0xd70   :  { %p3103_p4 = pnand %p3102_p3, %p3096_p0 }
 0xe33   :  { %v2728_v34 = vpop.f32.mrb[24].mxu1 }
 0xe34   :  { %v3653_v24 = vadd.f32 %v2728_v34, %v2464_v33  ;;  %v2133_v39 = vpop.f32.mrb[25].mxu1 }
 0xe35   :  { %v3655_v40 = vadd.f32 %v2464_v33, %v2133_v39 }
 0xe36   :  { %v3658_v31 = vmul.f32 0.70710677, %v3653_v24 }
 0xe37   :  { %v3661_v41 = vmul.f32 0.70710677, %v3655_v40 }
 0xe38   :  { %v2161_v8 = vand.u32 2147483647, %v3658_v31  ;;  %vm2241_vm9 = vcmp.lt.f32.partialorder %v3658_v31, 0.0 }
 0xe39   :  { %v2160_v30 = vand.u32 2147483647, %v3661_v41  ;;  %vm2240_vm10 = vcmp.lt.f32.partialorder %v3661_v41, 0.0 }
 0xe3a   :  { %v2165_v9 = vmul.f32 0.3275911, %v2161_v8  ;;  %v2217_v46 = vsub.f32 0.0, %v2161_v8 }
 0xe3b   :  { %v2164_v42 = vmul.f32 0.3275911, %v2160_v30  ;;  %v2216_v12 = vsub.f32 0.0, %v2160_v30 }
 0xe3c   :  { %v2169_v35 = vadd.f32 1.0, %v2165_v9  ;;  %v2221_v49 = vmul.f32 %v2217_v46, %v2161_v8 }
 0xe3d   :  { %v2168_v43 = vadd.f32 1.0, %v2164_v42  ;;  %v2220_v60 = vmul.f32 %v2216_v12, %v2160_v30 }
 0xe3e   :  { %3075 = vrcp.f32 %v2169_v35  ;;  %v2226_v58 = vmul.f32 1.442695, %v2221_v49 }
 0xe3f   :  { %3077 = vrcp.f32 %v2168_v43  ;;  %v2224_v17 = vmul.f32 1.442695, %v2220_v60 }
 0xe42   :  { %v2731_v37 = vpop.f32.mrb[26].mxu1 }
 0xe43   :  { %v3665_v44 = vadd.f32 %v2731_v37, %v2464_v33  ;;  %v2143_v45 = vpop.f32.mrb[27].mxu1 }
 0xe44   :  { %v3667_v55 = vadd.f32 %v2464_v33, %v2143_v45 }
 0xe45   :  { %v3670_v54 = vmul.f32 0.70710677, %v3665_v44 }
 0xe46   :  { %v3673_v47 = vmul.f32 0.70710677, %v3667_v55 }
 0xe47   :  { %v2163_v48 = vand.u32 2147483647, %v3670_v54  ;;  %vm2243_vm11 = vcmp.lt.f32.partialorder %v3670_v54, 0.0 }
 0xe48   :  { %v3076_v38 = vpop.eup %3075  ;;  %v2162_v36 = vand.u32 2147483647, %v3673_v47  ;;  %vm2242_vm12 = vcmp.lt.f32.partialorder %v3673_v47, 0.0 }
 0xe49   :  { %v3078_v50 = vpop.eup %3077  ;;  %v2181_v51 = vmul.f32 1.0614054, %v3076_v38  ;;  %v2167_v52 = vmul.f32 0.3275911, %v2163_v48  ;;  %v2219_v0 = vsub.f32 0.0, %v2163_v48 }
 0xe4a   :  { %v2166_v53 = vmul.f32 0.3275911, %v2162_v36  ;;  %v2180_v59 = vmul.f32 1.0614054, %v3078_v50  ;;  %v2218_v1 = vsub.f32 0.0, %v2162_v36 }
 0xe4b   :  { %v2185_v56 = vadd.f32 -1.4531521, %v2181_v51  ;;  %v2171_v57 = vadd.f32 1.0, %v2167_v52  ;;  %v2223_v11 = vmul.f32 %v2219_v0, %v2163_v48  ;;  %v2153_v52 = vmul.f32 0.5, %v3653_v24 }
 0xe4c   :  { %v2170_v61 = vadd.f32 1.0, %v2166_v53  ;;  %v2184_v14 = vadd.f32 -1.4531521, %v2180_v59  ;;  %v2222_v16 = vmul.f32 %v2218_v1, %v2162_v36  ;;  %v2154_v0 = vmul.f32 0.5, %v3667_v55 }
 0xe4d   :  { %v2189_v19 = vmul.f32 %v3076_v38, %v2185_v56  ;;  %3079 = vrcp.f32 %v2171_v57  ;;  %v2230_v32 = vmul.f32 1.442695, %v2223_v11 }
 0xe4e   :  { %3081 = vrcp.f32 %v2170_v61  ;;  %v2188_v62 = vmul.f32 %v3078_v50, %v2184_v14  ;;  %v2228_v34 = vmul.f32 1.442695, %v2222_v16 }
 0xe4f   :  { %v2193_v63 = vadd.f32 1.4214138, %v2189_v19  ;;  %3083 = vpow2.f32 %v2226_v58 }
 0xe50   :  { %v2192_v15 = vadd.f32 1.4214138, %v2188_v62  ;;  %3085 = vpow2.f32 %v2224_v17 }
 0xe51   :  { %v2197_v2 = vmul.f32 %v3076_v38, %v2193_v63  ;;  %3087 = vpow2.f32 %v2230_v32 }
 0xe52   :  { %v2196_v3 = vmul.f32 %v3078_v50, %v2192_v15  ;;  %3089 = vpow2.f32 %v2228_v34 }
 0xe53   :  { %v2201_v20 = vadd.f32 -0.28449672, %v2197_v2 }
 0xe54   :  { %v2200_v4 = vadd.f32 -0.28449672, %v2196_v3 }
 0xe55   :  { %v2205_v5 = vmul.f32 %v3076_v38, %v2201_v20 }
 0xe56   :  { %v2204_v6 = vmul.f32 %v3078_v50, %v2200_v4  ;;  %v2155_v4 = vmul.f32 0.5, %v3665_v44 }
 0xe57   :  { %v3080_v7 = vpop.eup %3079  ;;  %v2209_v10 = vadd.f32 0.2548296, %v2205_v5 }
 0xe58   :  { %v3082_v13 = vpop.eup %3081  ;;  %v2208_v18 = vadd.f32 0.2548296, %v2204_v6  ;;  %v2183_v21 = vmul.f32 1.0614054, %v3080_v7 }
 0xe59   :  { %v2213_v22 = vmul.f32 %v3076_v38, %v2209_v10  ;;  %v2182_v23 = vmul.f32 1.0614054, %v3082_v13  ;;  %v3084_v25 = vpop.eup %3083 }
 0xe5a   :  { %v2212_v26 = vmul.f32 %v3078_v50, %v2208_v18  ;;  %v2187_v27 = vadd.f32 -1.4531521, %v2183_v21  ;;  %v3086_v28 = vpop.eup %3085  ;;  %v2152_v50 = vmul.f32 0.5, %v3655_v40 }
 0xe5b   :  { %v2233_v29 = vmul.f32 %v3084_v25, %v2213_v22  ;;  %v2186_v33 = vadd.f32 -1.4531521, %v2182_v23  ;;  %v3088_v41 = vpop.eup %3087 }
 0xe5c   :  { %v2232_v39 = vmul.f32 %v3086_v28, %v2212_v26  ;;  %v2191_v8 = vmul.f32 %v3080_v7, %v2187_v27  ;;  %v3090_v19 = vpop.eup %3089 }
 0xe5d   :  { %v2237_v30 = vsub.f32 1.0, %v2233_v29  ;;  %v2190_v9 = vmul.f32 %v3082_v13, %v2186_v33 }
 0xe5e   :  { %v2236_v42 = vsub.f32 1.0, %v2232_v39  ;;  %v2195_v35 = vadd.f32 1.4214138, %v2191_v8 }
 0xe5f   :  { %v2245_v43 = vsub.f32 0.0, %v2237_v30  ;;  %v2194_v37 = vadd.f32 1.4214138, %v2190_v9 }
 0xe60   :  { %v2244_v45 = vsub.f32 0.0, %v2236_v42  ;;  %v2199_v46 = vmul.f32 %v3080_v7, %v2195_v35 }
 0xe61   :  { %v2249_v12 = vsel %vm2241_vm9, %v2245_v43, %v2237_v30  ;;  %v2198_v48 = vmul.f32 %v3082_v13, %v2194_v37 }
 0xe62   :  { %v2253_v38 = vadd.f32 1.0, %v2249_v12  ;;  %v2248_v49 = vsel %vm2240_vm10, %v2244_v45, %v2236_v42  ;;  %v2203_v36 = vadd.f32 -0.28449672, %v2199_v46 }
 0xe63   :  { %v2252_v51 = vadd.f32 1.0, %v2248_v49  ;;  %v2202_v60 = vadd.f32 -0.28449672, %v2198_v48 }
 0xe64   :  { %v2207_v53 = vmul.f32 %v3080_v7, %v2203_v36  ;;  %v2257_v31 = vmul.f32 %v2253_v38, %v2153_v52 }
 0xe65   :  { %v2256_v59 = vmul.f32 %v2252_v51, %v2152_v50  ;;  %v2206_v56 = vmul.f32 %v3082_v13, %v2202_v60 }
 0xe66   :  { %v2211_v57 = vadd.f32 0.2548296, %v2207_v53 }
 0xe67   :  { %2764 = vmatprep.mubr.f32.mxu0 %v2256_v59  ;;  %v2210_v58 = vadd.f32 0.2548296, %v2206_v56 }
 0xe68   :  { %2765 = vmatmul.mubr.f32.vlgmr.msra.gmra.mrb[16].mxu0 %v2257_v31  ;;  %v2215_v61 = vmul.f32 %v3080_v7, %v2211_v57 }
 0xe69   :  { %v2214_v14 = vmul.f32 %v3082_v13, %v2210_v58 }
 0xe6a   :  { %v2235_v17 = vmul.f32 %v3088_v41, %v2215_v61 }
 0xe6b   :  { %v2234_v62 = vmul.f32 %v3090_v19, %v2214_v14 }
 0xe6c   :  { %v2239_v63 = vsub.f32 1.0, %v2235_v17 }
 0xe6d   :  { %v2238_v40 = vsub.f32 1.0, %v2234_v62 }
 0xe6e   :  { %v2247_v15 = vsub.f32 0.0, %v2239_v63 }
 0xe6f   :  { %v2246_v24 = vsub.f32 0.0, %v2238_v40 }
 0xe70   :  { %v2251_v2 = vsel %vm2243_vm11, %v2247_v15, %v2239_v63 }
 0xe71   :  { %v2250_v3 = vsel %vm2242_vm12, %v2246_v24, %v2238_v40  ;;  %v2255_v20 = vadd.f32 1.0, %v2251_v2 }
 0xe72   :  { %v2254_v1 = vadd.f32 1.0, %v2250_v3 }
 0xe73   :  { %v2259_v6 = vmul.f32 %v2255_v20, %v2155_v4 }
 0xe74   :  { %v2258_v5 = vmul.f32 %v2254_v1, %v2154_v0 }
 0xe76   :  { %2767 = vmatprep.mubr.f32.mxu0 %v2258_v5 }
 0xe77   :  { %2768 = vmatmul.mubr.f32.gmra.mrb[18].mxu0 %v2259_v6 }
 0xe78   :  { %3106 = shalt.err (!%p3103_p4)
}
 0xe79   :  { %s3107_s22 = scalar_lea.hbm %s3735_s13, 2048 }
 0xe7a   :  { %p3108_p5 = scmp.ne.s32.totalorder %s3735_s13, %s3107_s22  ;;  %p3111_p6 = scmp.lt.u32.totalorder %s3107_s22, %s3735_s13 }
 0xe7c   :  { %p3113_p7 = pnand %p3111_p6, %p3108_p5 }
 0xe7e   :  { %3116 = shalt.err (!%p3113_p7)
}
 0xe7f   :  { %s3158_s26 = smov 128   ;;  %v2469_v44 = vld [vmem:[%s3733_s11] ss:$0 sm:$0xff]  ;;  %s3159_s14 = smov [#allocation2]  }
 0xe80   :  { %2395 = dma.vmem_to_hbm [thread:$0]  %s2390_s10, 2048, %s3735_s13, [#allocation5], %s3158_s26, %s3158_s26, %s3154_s24  }
 0xe81   :  { %s2377_s8 = sshll.u32 %s3159_s14, 4  ;;  %s2378_s8 = int_to_ptr.vmem [resolvable:$true] %s2377_s8 }
 0xe82   :  { %s3117_s11 = scalar_lea.vmem %s2378_s8, 512  ;;  %p3122_p9 = scmp.lt.s32.totalorder %s2378_s8, %s2378_s8 }
 0xe83   :  { %p3118_p8 = scmp.ne.s32.totalorder %s2378_s8, %s3117_s11  ;;  %p3123_p10 = scmp.lt.s32.totalorder %s3117_s11, %s3117_s11 }
 0xe85   :  { %p3124_p11 = por %p3123_p10, %p3122_p9 }
 0xe87   :  { %p3125_p12 = pnand %p3124_p11, %p3118_p8 }
 0xf3b   :  { %v2766_v55 = vpop.f32.mrb[16].mxu0 }
 0xf3c   :  { %v2355_v54 = vadd.f32 %v2766_v55, %v2469_v44  ;;  %v2349_v47 = vpop.f32.mrb[17].mxu0 }
 0xf3d   :  { %v2350_v7 = vadd.f32 %v2469_v44, %v2349_v47 }
 0xf3e   :  { %2369 = vst.msk [vmem:[#allocation2 + $0x8] sm:$0xff] %vm60_vm0, %v2355_v54 }
 0xf3f   :  { %2368 = vst.msk [vmem:[#allocation2] sm:$0xff] %vm60_vm0, %v2350_v7 }
 0xf4a   :  { %v2769_v10 = vpop.f32.mrb[18].mxu0 }
 0xf4b   :  { %v2365_v11 = vadd.f32 %v2769_v10, %v2469_v44  ;;  %v2359_v13 = vpop.f32.mrb[19].mxu0 }
 0xf4c   :  { %v2360_v16 = vadd.f32 %v2469_v44, %v2359_v13 }
 0xf4d   :  { %2371 = vst.msk [vmem:[#allocation2 + $0x18] sm:$0xff] %vm60_vm0, %v2365_v11 }
 0xf4e   :  { %2370 = vst.msk [vmem:[#allocation2 + $0x10] sm:$0xff] %vm60_vm0, %v2360_v16 }
 0xf4f   :  { %3128 = shalt.err (!%p3125_p12)
}
 0xf50   :  { %s3129_s6 = scalar_lea.hbm %s3734_s12, 512 }
 0xf51   :  { %p3130_p13 = scmp.ne.s32.totalorder %s3734_s12, %s3129_s6  ;;  %p3133_p0 = scmp.lt.u32.totalorder %s3129_s6, %s3734_s12 }
 0xf53   :  { %p3135_p1 = pnand %p3133_p0, %p3130_p13 }
 0xf55   :  { %3138 = shalt.err (!%p3135_p1)
}
 0xf56   :  { %2383 = dma.vmem_to_hbm [thread:$0]  %s2378_s8, 512, %s3734_s12, [#allocation3], %s3158_s26, %s3158_s26, %s3154_s24  }
 0xf57   :  { %3139 = dma.done.wait [#allocation3], 512  }
 0xf58   :  { %3140 = vsyncadd [#allocation3], 4294966784 }
 0xf59   :  { %3141 = dma.done.wait [#allocation5], 2048  }
 0xf5a   :  { %3142 = vsyncadd [#allocation5], 4294965248 }
 0xf5b   :  { %2402 = vsyncpa [#allocation3], 1 }
 0xf5c   :  { %2403 = vsyncpa [#allocation5], 1 }

</bundles_post_ra>
